<compile_context>
chip_gen: v7x
topology: tpu7x:2x2x1
jax: 0.10.0
libtpu: 0.0.40
codegen_flags: <defaults>
</compile_context>

<pallas_src>
import math

import numpy as np
import jax
import jax.numpy as jnp
from jax.experimental import pallas as pl
from jax.experimental.pallas import tpu as pltpu

# ---------------- small, deterministic hyper-parameters ----------------------
T = 4                          # time steps            (x.shape[0])
B = 2                          # batch                 (x.shape[1])
DEPTH = 2                      # fp['depth']           (input channels)
SIZE = 10                      # fp['size']            (input spatial)
C1, F1 = 4, 3                  # cp['channels_1'], cp['filter_1']
C2, F2 = 6, 3                  # cp['channels_2'], cp['filter_2']
H1 = SIZE - F1 + 1             # conv1_size = 8
H2 = H1 - F2 + 1               # conv2_size = 6
N_IN = DEPTH * SIZE * SIZE     # 200   flattened input per timestep
N_CONV1 = C1 * H1 * H1         # 256   flattened conv1 output
NUM_CONV2 = C2 * H2 * H2       # 216   flattened conv2 output
NUM_REC = 32                   # netp['num_rec']
NUM_CLASSES = 11
DT, TAU_M = 1.0, 10.0
BETA = float(math.exp(-DT / TAU_M))   # netp['beta']
V_TH = 1.0                            # netp['v_th']


# ---------------------------- Pallas kernel ----------------------------------
def _lif_step(mem_prev, cur):
    """snntorch Leaky (init_hidden, reset-by-subtraction) single step."""
    rst = (mem_prev > V_TH).astype(jnp.float32)        # reset from previous mem
    mem_new = BETA * mem_prev + cur - rst * V_TH
    spk = (mem_new > V_TH).astype(jnp.float32)         # heaviside forward
    return spk, mem_new


def sc_kernel(x_ref, w1_ref, b1_ref, w2_ref, b2_ref,
              win_ref, bin_ref, win2_ref, bin2_ref, wout_ref, bout_ref,
              spk_out_ref, mem_out_ref):
    # Membrane potentials start at zero (snntorch init_hidden) and are carried
    # across the fully-unrolled time loop as plain values (registers).
    mem1 = jnp.zeros((B, N_CONV1), jnp.float32)
    mem2 = jnp.zeros((B, NUM_CONV2), jnp.float32)
    mem_r1 = jnp.zeros((B, NUM_REC), jnp.float32)
    mem_r2 = jnp.zeros((B, NUM_REC), jnp.float32)
    mem_o = jnp.zeros((B, NUM_CLASSES), jnp.float32)

    for t in range(T):                         # fully unrolled (T = 4)
        x_t = x_ref[t]                         # (B, N_IN), (C,H,W) flatten

        # conv1 as one dense matmul on the flattened layout
        cur1 = jnp.dot(x_t, w1_ref[...],
                       preferred_element_type=jnp.float32) + b1_ref[...]
        spk1, mem1 = _lif_step(mem1, cur1)     # (B, 256)

        # conv2 as one dense matmul
        cur2 = jnp.dot(spk1, w2_ref[...],
                       preferred_element_type=jnp.float32) + b2_ref[...]
        spk2, mem2 = _lif_step(mem2, cur2)     # (B, 216), PyTorch flatten order

        # ff_in
        cur_in = jnp.dot(spk2, win_ref[...],
                         preferred_element_type=jnp.float32) + bin_ref[...]
        spk_r1, mem_r1 = _lif_step(mem_r1, cur_in)

        # ff_in2
        cur_in2 = jnp.dot(spk_r1, win2_ref[...],
                          preferred_element_type=jnp.float32) + bin2_ref[...]
        spk_r2, mem_r2 = _lif_step(mem_r2, cur_in2)

        # ff_out + output LIF
        cur_out = jnp.dot(spk_r2, wout_ref[...],
                          preferred_element_type=jnp.float32) + bout_ref[...]
        spk_o, mem_o = _lif_step(mem_o, cur_out)

        spk_out_ref[t] = spk_o
        mem_out_ref[t] = mem_o


# ------------------------------ wrapper ---------------------------------------
def _full_spec(shape):
    nd = len(shape)
    return pl.BlockSpec(shape, lambda i, _n=nd: (0,) * _n)


@jax.jit
def sc_forward(x_tbchw, params):
    """x_tbchw: (T, B, DEPTH, SIZE, SIZE) float — PyTorch (time, N, C, H, W)."""
    (w1d, b1d, w2d, b2d, w_in, b_in, w_in2, b_in2, w_out, b_out) = params
    # glue: (T, B, C, H, W) -> (T, B, C*H*W): PyTorch C-major flatten, lane-dense.
    x = x_tbchw.astype(jnp.float32).reshape(T, B, N_IN)

    in_specs = [
        _full_spec((T, B, N_IN)),
        _full_spec((N_IN, N_CONV1)),        _full_spec((1, N_CONV1)),
        _full_spec((N_CONV1, NUM_CONV2)),   _full_spec((1, NUM_CONV2)),
        _full_spec((NUM_CONV2, NUM_REC)),   _full_spec((1, NUM_REC)),
        _full_spec((NUM_REC, NUM_REC)),     _full_spec((1, NUM_REC)),
        _full_spec((NUM_REC, NUM_CLASSES)), _full_spec((1, NUM_CLASSES)),
    ]
    out_specs = [
        _full_spec((T, B, NUM_CLASSES)),
        _full_spec((T, B, NUM_CLASSES)),
    ]
    out_shape = (
        jax.ShapeDtypeStruct((T, B, NUM_CLASSES), jnp.float32),
        jax.ShapeDtypeStruct((T, B, NUM_CLASSES), jnp.float32),
    )

    # NOTE(v7x): at B=2 the second TensorCore is idle; if batch grows, add a
    # leading "parallel" batch grid axis (the sequential time loop cannot split).
    return pl.pallas_call(
        sc_kernel,
        out_shape=out_shape,
        grid_spec=pltpu.PrefetchScalarGridSpec(
            num_scalar_prefetch=0,
            grid=(1,),                       # single invocation; T unrolled inside
            in_specs=in_specs,
            out_specs=out_specs),
        compiler_params=pltpu.CompilerParams(
            dimension_semantics=("arbitrary",)),
    )(x, w1d, b1d, w2d, b2d, w_in, b_in, w_in2, b_in2, w_out, b_out)


# ------------------------- parameter preparation -------------------------------
def _conv_to_dense(w_oihw, in_c, in_hw):
    """Exact dense matrix of a valid, stride-1 Conv2d (no bias).

    Maps a (C,H,W)-flattened input (row index ci*in_hw^2 + ih*in_hw + iw) to a
    (C,H,W)-flattened output (col index co*out_hw^2 + oh*out_hw + ow), i.e.
    x_flat @ M == conv2d(x).reshape(B, -1) in PyTorch ordering.
    """
    w = np.asarray(w_oihw, dtype=np.float32)
    out_c, _, kh, kw = w.shape
    out_hw = in_hw - kh + 1
    dense = np.zeros((in_c, in_hw, in_hw, out_c, out_hw, out_hw), np.float32)
    for ki in range(kh):
        for kj in range(kw):
            wk = np.transpose(w[:, :, ki, kj])          # (in_c, out_c)
            for oh in range(out_hw):
                for ow in range(out_hw):
                    dense[:, oh + ki, ow + kj, :, oh, ow] = wk
    return jnp.asarray(
        dense.reshape(in_c * in_hw * in_hw, out_c * out_hw * out_hw))


def init_params(key):
    ks = jax.random.split(key, 10)
    # Synthetic, deterministic parameters in PyTorch layouts.
    w1_t = 0.4 * jax.random.normal(ks[0], (C1, DEPTH, F1, F1), jnp.float32)
    b1_t = 0.1 * jax.random.normal(ks[1], (C1,), jnp.float32)
    w2_t = 0.3 * jax.random.normal(ks[2], (C2, C1, F2, F2), jnp.float32)
    b2_t = 0.1 * jax.random.normal(ks[3], (C2,), jnp.float32)
    win_t = 0.1 * jax.random.normal(ks[4], (NUM_REC, NUM_CONV2), jnp.float32)
    bin_t = 0.1 * jax.random.normal(ks[5], (NUM_REC,), jnp.float32)
    win2_t = 0.2 * jax.random.normal(ks[6], (NUM_REC, NUM_REC), jnp.float32)
    bin2_t = 0.1 * jax.random.normal(ks[7], (NUM_REC,), jnp.float32)
    wout_t = 0.2 * jax.random.normal(ks[8], (NUM_CLASSES, NUM_REC), jnp.float32)
    bout_t = 0.1 * jax.random.normal(ks[9], (NUM_CLASSES,), jnp.float32)

    # glue: convolutions -> exact dense matrices over the (C,H,W) flatten;
    # linear layers -> y = x @ W.T + b form. The PyTorch flatten order of
    # spk_conv2.view(B, -1) is preserved exactly by construction.
    w1d = _conv_to_dense(w1_t, DEPTH, SIZE)                    # (200, 256)
    b1d = jnp.repeat(b1_t, H1 * H1).reshape(1, N_CONV1)
    w2d = _conv_to_dense(w2_t, C1, H1)                         # (256, 216)
    b2d = jnp.repeat(b2_t, H2 * H2).reshape(1, NUM_CONV2)
    return (w1d, b1d, w2d, b2d,
            win_t.T, bin_t.reshape(1, NUM_REC),
            win2_t.T, bin2_t.reshape(1, NUM_REC),
            wout_t.T, bout_t.reshape(1, NUM_CLASSES))


if __name__ == "__main__":
    kx = jax.random.PRNGKey(0)
    # x: (time_steps, batch, depth, size, size)  -- PyTorch NCHW per timestep
    x = jax.random.uniform(kx, (T, B, DEPTH, SIZE, SIZE), jnp.float32, 0.0, 1.0)
    params = init_params(jax.random.PRNGKey(1))

    spk_outs, mem_outs = sc_forward(x, params)
    jax.block_until_ready((spk_outs, mem_outs))

    assert spk_outs.shape == (T, B, NUM_CLASSES)
    assert mem_outs.shape == (T, B, NUM_CLASSES)
    assert bool(jnp.all(jnp.isfinite(mem_outs)))
    print("KERNEL_OK")
</pallas_src>

<mosaic_0001>
module attributes {stable_mosaic.version = 11 : i64} {
  func.func @sc_kernel(%arg0: i32, %arg1: memref<4x2x200xf32, #tpu.memory_space<vmem>>, %arg2: memref<200x256xf32, #tpu.memory_space<vmem>>, %arg3: memref<1x256xf32, #tpu.memory_space<vmem>>, %arg4: memref<256x216xf32, #tpu.memory_space<vmem>>, %arg5: memref<1x216xf32, #tpu.memory_space<vmem>>, %arg6: memref<216x32xf32, #tpu.memory_space<vmem>>, %arg7: memref<1x32xf32, #tpu.memory_space<vmem>>, %arg8: memref<32x32xf32, #tpu.memory_space<vmem>>, %arg9: memref<1x32xf32, #tpu.memory_space<vmem>>, %arg10: memref<32x11xf32, #tpu.memory_space<vmem>>, %arg11: memref<1x11xf32, #tpu.memory_space<vmem>>, %arg12: memref<4x2x11xf32, #tpu.memory_space<vmem>>, %arg13: memref<4x2x11xf32, #tpu.memory_space<vmem>>) attributes {dimension_semantics = [#tpu.dimension_semantics<arbitrary>], iteration_bounds = array<i64: 1>, scalar_prefetch = 0 : i64, scratch_operands = 0 : i64, tpu.core_type = #tpu.core_type<tc>, window_params = [{pipeline_mode = #tpu.pipeline_mode<synchronous>, transform_indices = @transform_0, window_bounds = array<i64: 4, 2, 200>}, {pipeline_mode = #tpu.pipeline_mode<synchronous>, transform_indices = @transform_1, window_bounds = array<i64: 200, 256>}, {pipeline_mode = #tpu.pipeline_mode<synchronous>, transform_indices = @transform_2, window_bounds = array<i64: 1, 256>}, {pipeline_mode = #tpu.pipeline_mode<synchronous>, transform_indices = @transform_3, window_bounds = array<i64: 256, 216>}, {pipeline_mode = #tpu.pipeline_mode<synchronous>, transform_indices = @transform_4, window_bounds = array<i64: 1, 216>}, {pipeline_mode = #tpu.pipeline_mode<synchronous>, transform_indices = @transform_5, window_bounds = array<i64: 216, 32>}, {pipeline_mode = #tpu.pipeline_mode<synchronous>, transform_indices = @transform_6, window_bounds = array<i64: 1, 32>}, {pipeline_mode = #tpu.pipeline_mode<synchronous>, transform_indices = @transform_7, window_bounds = array<i64: 32, 32>}, {pipeline_mode = #tpu.pipeline_mode<synchronous>, transform_indices = @transform_8, window_bounds = array<i64: 1, 32>}, {pipeline_mode = #tpu.pipeline_mode<synchronous>, transform_indices = @transform_9, window_bounds = array<i64: 32, 11>}, {pipeline_mode = #tpu.pipeline_mode<synchronous>, transform_indices = @transform_10, window_bounds = array<i64: 1, 11>}, {pipeline_mode = #tpu.pipeline_mode<synchronous>, transform_indices = @transform_11, window_bounds = array<i64: 4, 2, 11>}, {pipeline_mode = #tpu.pipeline_mode<synchronous>, transform_indices = @transform_12, window_bounds = array<i64: 4, 2, 11>}]} {
    %cst = arith.constant 0.000000e+00 : f32
    %0 = vector.broadcast %cst : f32 to vector<2x256xf32>
    %cst_0 = arith.constant 0.000000e+00 : f32
    %1 = vector.broadcast %cst_0 : f32 to vector<2x216xf32>
    %cst_1 = arith.constant 0.000000e+00 : f32
    %2 = vector.broadcast %cst_1 : f32 to vector<2x32xf32>
    %cst_2 = arith.constant 0.000000e+00 : f32
    %3 = vector.broadcast %cst_2 : f32 to vector<2x32xf32>
    %cst_3 = arith.constant 0.000000e+00 : f32
    %4 = vector.broadcast %cst_3 : f32 to vector<2x11xf32>
    %c0 = arith.constant 0 : index
    %c0_4 = arith.constant 0 : index
    %c0_5 = arith.constant 0 : index
    %5 = vector.load %arg1[%c0, %c0_4, %c0_5] : memref<4x2x200xf32, #tpu.memory_space<vmem>>, vector<1x2x200xf32>
    %6 = vector.shape_cast %5 : vector<1x2x200xf32> to vector<2x200xf32>
    %c0_6 = arith.constant 0 : index
    %c0_7 = arith.constant 0 : index
    %7 = vector.load %arg2[%c0_6, %c0_7] : memref<200x256xf32, #tpu.memory_space<vmem>>, vector<200x256xf32>
    %cst_8 = arith.constant dense<0.000000e+00> : vector<2x256xf32>
    %8 = tpu.matmul %6, %7, %cst_8 {dimension_numbers = #tpu.dot_dimension_numbers<[1], [0], [0], [1], [0, 0, 1, 1], [], []>} : vector<2x200xf32>, vector<200x256xf32>, vector<2x256xf32> -> vector<2x256xf32>
    %c0_9 = arith.constant 0 : index
    %c0_10 = arith.constant 0 : index
    %9 = vector.load %arg3[%c0_9, %c0_10] : memref<1x256xf32, #tpu.memory_space<vmem>>, vector<1x256xf32>
    %10 = vector.broadcast %9 : vector<1x256xf32> to vector<2x256xf32>
    %11 = arith.addf %8, %10 : vector<2x256xf32>
    %cst_11 = arith.constant 1.000000e+00 : f32
    %12 = vector.broadcast %cst_11 : f32 to vector<2x256xf32>
    %13 = arith.cmpf ogt, %0, %12 : vector<2x256xf32>
    %14 = arith.extui %13 : vector<2x256xi1> to vector<2x256xi32>
    %15 = arith.sitofp %14 : vector<2x256xi32> to vector<2x256xf32>
    %cst_12 = arith.constant 0.904837429 : f32
    %16 = vector.broadcast %cst_12 : f32 to vector<2x256xf32>
    %17 = arith.mulf %16, %0 : vector<2x256xf32>
    %18 = arith.addf %17, %11 : vector<2x256xf32>
    %cst_13 = arith.constant 1.000000e+00 : f32
    %19 = vector.broadcast %cst_13 : f32 to vector<2x256xf32>
    %20 = arith.mulf %15, %19 : vector<2x256xf32>
    %21 = arith.subf %18, %20 : vector<2x256xf32>
    %cst_14 = arith.constant 1.000000e+00 : f32
    %22 = vector.broadcast %cst_14 : f32 to vector<2x256xf32>
    %23 = arith.cmpf ogt, %21, %22 : vector<2x256xf32>
    %24 = arith.extui %23 : vector<2x256xi1> to vector<2x256xi32>
    %25 = arith.sitofp %24 : vector<2x256xi32> to vector<2x256xf32>
    %c0_15 = arith.constant 0 : index
    %c0_16 = arith.constant 0 : index
    %26 = vector.load %arg4[%c0_15, %c0_16] : memref<256x216xf32, #tpu.memory_space<vmem>>, vector<256x216xf32>
    %cst_17 = arith.constant dense<0.000000e+00> : vector<2x216xf32>
    %27 = tpu.matmul %25, %26, %cst_17 {dimension_numbers = #tpu.dot_dimension_numbers<[1], [0], [0], [1], [0, 0, 1, 1], [], []>} : vector<2x256xf32>, vector<256x216xf32>, vector<2x216xf32> -> vector<2x216xf32>
    %c0_18 = arith.constant 0 : index
    %c0_19 = arith.constant 0 : index
    %28 = vector.load %arg5[%c0_18, %c0_19] : memref<1x216xf32, #tpu.memory_space<vmem>>, vector<1x216xf32>
    %29 = vector.broadcast %28 : vector<1x216xf32> to vector<2x216xf32>
    %30 = arith.addf %27, %29 : vector<2x216xf32>
    %cst_20 = arith.constant 1.000000e+00 : f32
    %31 = vector.broadcast %cst_20 : f32 to vector<2x216xf32>
    %32 = arith.cmpf ogt, %1, %31 : vector<2x216xf32>
    %33 = arith.extui %32 : vector<2x216xi1> to vector<2x216xi32>
    %34 = arith.sitofp %33 : vector<2x216xi32> to vector<2x216xf32>
    %cst_21 = arith.constant 0.904837429 : f32
    %35 = vector.broadcast %cst_21 : f32 to vector<2x216xf32>
    %36 = arith.mulf %35, %1 : vector<2x216xf32>
    %37 = arith.addf %36, %30 : vector<2x216xf32>
    %cst_22 = arith.constant 1.000000e+00 : f32
    %38 = vector.broadcast %cst_22 : f32 to vector<2x216xf32>
    %39 = arith.mulf %34, %38 : vector<2x216xf32>
    %40 = arith.subf %37, %39 : vector<2x216xf32>
    %cst_23 = arith.constant 1.000000e+00 : f32
    %41 = vector.broadcast %cst_23 : f32 to vector<2x216xf32>
    %42 = arith.cmpf ogt, %40, %41 : vector<2x216xf32>
    %43 = arith.extui %42 : vector<2x216xi1> to vector<2x216xi32>
    %44 = arith.sitofp %43 : vector<2x216xi32> to vector<2x216xf32>
    %c0_24 = arith.constant 0 : index
    %c0_25 = arith.constant 0 : index
    %45 = vector.load %arg6[%c0_24, %c0_25] : memref<216x32xf32, #tpu.memory_space<vmem>>, vector<216x32xf32>
    %cst_26 = arith.constant dense<0.000000e+00> : vector<2x32xf32>
    %46 = tpu.matmul %44, %45, %cst_26 {dimension_numbers = #tpu.dot_dimension_numbers<[1], [0], [0], [1], [0, 0, 1, 1], [], []>} : vector<2x216xf32>, vector<216x32xf32>, vector<2x32xf32> -> vector<2x32xf32>
    %c0_27 = arith.constant 0 : index
    %c0_28 = arith.constant 0 : index
    %47 = vector.load %arg7[%c0_27, %c0_28] : memref<1x32xf32, #tpu.memory_space<vmem>>, vector<1x32xf32>
    %48 = vector.broadcast %47 : vector<1x32xf32> to vector<2x32xf32>
    %49 = arith.addf %46, %48 : vector<2x32xf32>
    %cst_29 = arith.constant 1.000000e+00 : f32
    %50 = vector.broadcast %cst_29 : f32 to vector<2x32xf32>
    %51 = arith.cmpf ogt, %2, %50 : vector<2x32xf32>
    %52 = arith.extui %51 : vector<2x32xi1> to vector<2x32xi32>
    %53 = arith.sitofp %52 : vector<2x32xi32> to vector<2x32xf32>
    %cst_30 = arith.constant 0.904837429 : f32
    %54 = vector.broadcast %cst_30 : f32 to vector<2x32xf32>
    %55 = arith.mulf %54, %2 : vector<2x32xf32>
    %56 = arith.addf %55, %49 : vector<2x32xf32>
    %cst_31 = arith.constant 1.000000e+00 : f32
    %57 = vector.broadcast %cst_31 : f32 to vector<2x32xf32>
    %58 = arith.mulf %53, %57 : vector<2x32xf32>
    %59 = arith.subf %56, %58 : vector<2x32xf32>
    %cst_32 = arith.constant 1.000000e+00 : f32
    %60 = vector.broadcast %cst_32 : f32 to vector<2x32xf32>
    %61 = arith.cmpf ogt, %59, %60 : vector<2x32xf32>
    %62 = arith.extui %61 : vector<2x32xi1> to vector<2x32xi32>
    %63 = arith.sitofp %62 : vector<2x32xi32> to vector<2x32xf32>
    %c0_33 = arith.constant 0 : index
    %c0_34 = arith.constant 0 : index
    %64 = vector.load %arg8[%c0_33, %c0_34] : memref<32x32xf32, #tpu.memory_space<vmem>>, vector<32x32xf32>
    %cst_35 = arith.constant dense<0.000000e+00> : vector<2x32xf32>
    %65 = tpu.matmul %63, %64, %cst_35 {dimension_numbers = #tpu.dot_dimension_numbers<[1], [0], [0], [1], [0, 0, 1, 1], [], []>} : vector<2x32xf32>, vector<32x32xf32>, vector<2x32xf32> -> vector<2x32xf32>
    %c0_36 = arith.constant 0 : index
    %c0_37 = arith.constant 0 : index
    %66 = vector.load %arg9[%c0_36, %c0_37] : memref<1x32xf32, #tpu.memory_space<vmem>>, vector<1x32xf32>
    %67 = vector.broadcast %66 : vector<1x32xf32> to vector<2x32xf32>
    %68 = arith.addf %65, %67 : vector<2x32xf32>
    %cst_38 = arith.constant 1.000000e+00 : f32
    %69 = vector.broadcast %cst_38 : f32 to vector<2x32xf32>
    %70 = arith.cmpf ogt, %3, %69 : vector<2x32xf32>
    %71 = arith.extui %70 : vector<2x32xi1> to vector<2x32xi32>
    %72 = arith.sitofp %71 : vector<2x32xi32> to vector<2x32xf32>
    %cst_39 = arith.constant 0.904837429 : f32
    %73 = vector.broadcast %cst_39 : f32 to vector<2x32xf32>
    %74 = arith.mulf %73, %3 : vector<2x32xf32>
    %75 = arith.addf %74, %68 : vector<2x32xf32>
    %cst_40 = arith.constant 1.000000e+00 : f32
    %76 = vector.broadcast %cst_40 : f32 to vector<2x32xf32>
    %77 = arith.mulf %72, %76 : vector<2x32xf32>
    %78 = arith.subf %75, %77 : vector<2x32xf32>
    %cst_41 = arith.constant 1.000000e+00 : f32
    %79 = vector.broadcast %cst_41 : f32 to vector<2x32xf32>
    %80 = arith.cmpf ogt, %78, %79 : vector<2x32xf32>
    %81 = arith.extui %80 : vector<2x32xi1> to vector<2x32xi32>
    %82 = arith.sitofp %81 : vector<2x32xi32> to vector<2x32xf32>
    %c0_42 = arith.constant 0 : index
    %c0_43 = arith.constant 0 : index
    %83 = vector.load %arg10[%c0_42, %c0_43] : memref<32x11xf32, #tpu.memory_space<vmem>>, vector<32x11xf32>
    %cst_44 = arith.constant dense<0.000000e+00> : vector<2x11xf32>
    %84 = tpu.matmul %82, %83, %cst_44 {dimension_numbers = #tpu.dot_dimension_numbers<[1], [0], [0], [1], [0, 0, 1, 1], [], []>} : vector<2x32xf32>, vector<32x11xf32>, vector<2x11xf32> -> vector<2x11xf32>
    %c0_45 = arith.constant 0 : index
    %c0_46 = arith.constant 0 : index
    %85 = vector.load %arg11[%c0_45, %c0_46] : memref<1x11xf32, #tpu.memory_space<vmem>>, vector<1x11xf32>
    %86 = vector.broadcast %85 : vector<1x11xf32> to vector<2x11xf32>
    %87 = arith.addf %84, %86 : vector<2x11xf32>
    %cst_47 = arith.constant 1.000000e+00 : f32
    %88 = vector.broadcast %cst_47 : f32 to vector<2x11xf32>
    %89 = arith.cmpf ogt, %4, %88 : vector<2x11xf32>
    %90 = arith.extui %89 : vector<2x11xi1> to vector<2x11xi32>
    %91 = arith.sitofp %90 : vector<2x11xi32> to vector<2x11xf32>
    %cst_48 = arith.constant 0.904837429 : f32
    %92 = vector.broadcast %cst_48 : f32 to vector<2x11xf32>
    %93 = arith.mulf %92, %4 : vector<2x11xf32>
    %94 = arith.addf %93, %87 : vector<2x11xf32>
    %cst_49 = arith.constant 1.000000e+00 : f32
    %95 = vector.broadcast %cst_49 : f32 to vector<2x11xf32>
    %96 = arith.mulf %91, %95 : vector<2x11xf32>
    %97 = arith.subf %94, %96 : vector<2x11xf32>
    %cst_50 = arith.constant 1.000000e+00 : f32
    %98 = vector.broadcast %cst_50 : f32 to vector<2x11xf32>
    %99 = arith.cmpf ogt, %97, %98 : vector<2x11xf32>
    %100 = arith.extui %99 : vector<2x11xi1> to vector<2x11xi32>
    %101 = arith.sitofp %100 : vector<2x11xi32> to vector<2x11xf32>
    %c0_51 = arith.constant 0 : index
    %c0_52 = arith.constant 0 : index
    %c0_53 = arith.constant 0 : index
    %102 = vector.load %arg12[%c0_51, %c0_52, %c0_53] : memref<4x2x11xf32, #tpu.memory_space<vmem>>, vector<1x2x11xf32>
    %103 = vector.shape_cast %102 : vector<1x2x11xf32> to vector<2x11xf32>
    %104 = vector.shape_cast %101 : vector<2x11xf32> to vector<1x2x11xf32>
    tpu.vector_store %arg12[%c0_51, %c0_52, %c0_53], %104 {strides = array<i32>} : memref<4x2x11xf32, #tpu.memory_space<vmem>>, vector<1x2x11xf32>,
    %c0_54 = arith.constant 0 : index
    %c0_55 = arith.constant 0 : index
    %c0_56 = arith.constant 0 : index
    %105 = vector.load %arg13[%c0_54, %c0_55, %c0_56] : memref<4x2x11xf32, #tpu.memory_space<vmem>>, vector<1x2x11xf32>
    %106 = vector.shape_cast %105 : vector<1x2x11xf32> to vector<2x11xf32>
    %107 = vector.shape_cast %97 : vector<2x11xf32> to vector<1x2x11xf32>
    tpu.vector_store %arg13[%c0_54, %c0_55, %c0_56], %107 {strides = array<i32>} : memref<4x2x11xf32, #tpu.memory_space<vmem>>, vector<1x2x11xf32>,
    %c1 = arith.constant 1 : index
    %c0_57 = arith.constant 0 : index
    %c0_58 = arith.constant 0 : index
    %108 = vector.load %arg1[%c1, %c0_57, %c0_58] : memref<4x2x200xf32, #tpu.memory_space<vmem>>, vector<1x2x200xf32>
    %109 = vector.shape_cast %108 : vector<1x2x200xf32> to vector<2x200xf32>
    %c0_59 = arith.constant 0 : index
    %c0_60 = arith.constant 0 : index
    %110 = vector.load %arg2[%c0_59, %c0_60] : memref<200x256xf32, #tpu.memory_space<vmem>>, vector<200x256xf32>
    %cst_61 = arith.constant dense<0.000000e+00> : vector<2x256xf32>
    %111 = tpu.matmul %109, %110, %cst_61 {dimension_numbers = #tpu.dot_dimension_numbers<[1], [0], [0], [1], [0, 0, 1, 1], [], []>} : vector<2x200xf32>, vector<200x256xf32>, vector<2x256xf32> -> vector<2x256xf32>
    %c0_62 = arith.constant 0 : index
    %c0_63 = arith.constant 0 : index
    %112 = vector.load %arg3[%c0_62, %c0_63] : memref<1x256xf32, #tpu.memory_space<vmem>>, vector<1x256xf32>
    %113 = vector.broadcast %112 : vector<1x256xf32> to vector<2x256xf32>
    %114 = arith.addf %111, %113 : vector<2x256xf32>
    %cst_64 = arith.constant 1.000000e+00 : f32
    %115 = vector.broadcast %cst_64 : f32 to vector<2x256xf32>
    %116 = arith.cmpf ogt, %21, %115 : vector<2x256xf32>
    %117 = arith.extui %116 : vector<2x256xi1> to vector<2x256xi32>
    %118 = arith.sitofp %117 : vector<2x256xi32> to vector<2x256xf32>
    %cst_65 = arith.constant 0.904837429 : f32
    %119 = vector.broadcast %cst_65 : f32 to vector<2x256xf32>
    %120 = arith.mulf %119, %21 : vector<2x256xf32>
    %121 = arith.addf %120, %114 : vector<2x256xf32>
    %cst_66 = arith.constant 1.000000e+00 : f32
    %122 = vector.broadcast %cst_66 : f32 to vector<2x256xf32>
    %123 = arith.mulf %118, %122 : vector<2x256xf32>
    %124 = arith.subf %121, %123 : vector<2x256xf32>
    %cst_67 = arith.constant 1.000000e+00 : f32
    %125 = vector.broadcast %cst_67 : f32 to vector<2x256xf32>
    %126 = arith.cmpf ogt, %124, %125 : vector<2x256xf32>
    %127 = arith.extui %126 : vector<2x256xi1> to vector<2x256xi32>
    %128 = arith.sitofp %127 : vector<2x256xi32> to vector<2x256xf32>
    %c0_68 = arith.constant 0 : index
    %c0_69 = arith.constant 0 : index
    %129 = vector.load %arg4[%c0_68, %c0_69] : memref<256x216xf32, #tpu.memory_space<vmem>>, vector<256x216xf32>
    %cst_70 = arith.constant dense<0.000000e+00> : vector<2x216xf32>
    %130 = tpu.matmul %128, %129, %cst_70 {dimension_numbers = #tpu.dot_dimension_numbers<[1], [0], [0], [1], [0, 0, 1, 1], [], []>} : vector<2x256xf32>, vector<256x216xf32>, vector<2x216xf32> -> vector<2x216xf32>
    %c0_71 = arith.constant 0 : index
    %c0_72 = arith.constant 0 : index
    %131 = vector.load %arg5[%c0_71, %c0_72] : memref<1x216xf32, #tpu.memory_space<vmem>>, vector<1x216xf32>
    %132 = vector.broadcast %131 : vector<1x216xf32> to vector<2x216xf32>
    %133 = arith.addf %130, %132 : vector<2x216xf32>
    %cst_73 = arith.constant 1.000000e+00 : f32
    %134 = vector.broadcast %cst_73 : f32 to vector<2x216xf32>
    %135 = arith.cmpf ogt, %40, %134 : vector<2x216xf32>
    %136 = arith.extui %135 : vector<2x216xi1> to vector<2x216xi32>
    %137 = arith.sitofp %136 : vector<2x216xi32> to vector<2x216xf32>
    %cst_74 = arith.constant 0.904837429 : f32
    %138 = vector.broadcast %cst_74 : f32 to vector<2x216xf32>
    %139 = arith.mulf %138, %40 : vector<2x216xf32>
    %140 = arith.addf %139, %133 : vector<2x216xf32>
    %cst_75 = arith.constant 1.000000e+00 : f32
    %141 = vector.broadcast %cst_75 : f32 to vector<2x216xf32>
    %142 = arith.mulf %137, %141 : vector<2x216xf32>
    %143 = arith.subf %140, %142 : vector<2x216xf32>
    %cst_76 = arith.constant 1.000000e+00 : f32
    %144 = vector.broadcast %cst_76 : f32 to vector<2x216xf32>
    %145 = arith.cmpf ogt, %143, %144 : vector<2x216xf32>
    %146 = arith.extui %145 : vector<2x216xi1> to vector<2x216xi32>
    %147 = arith.sitofp %146 : vector<2x216xi32> to vector<2x216xf32>
    %c0_77 = arith.constant 0 : index
    %c0_78 = arith.constant 0 : index
    %148 = vector.load %arg6[%c0_77, %c0_78] : memref<216x32xf32, #tpu.memory_space<vmem>>, vector<216x32xf32>
    %cst_79 = arith.constant dense<0.000000e+00> : vector<2x32xf32>
    %149 = tpu.matmul %147, %148, %cst_79 {dimension_numbers = #tpu.dot_dimension_numbers<[1], [0], [0], [1], [0, 0, 1, 1], [], []>} : vector<2x216xf32>, vector<216x32xf32>, vector<2x32xf32> -> vector<2x32xf32>
    %c0_80 = arith.constant 0 : index
    %c0_81 = arith.constant 0 : index
    %150 = vector.load %arg7[%c0_80, %c0_81] : memref<1x32xf32, #tpu.memory_space<vmem>>, vector<1x32xf32>
    %151 = vector.broadcast %150 : vector<1x32xf32> to vector<2x32xf32>
    %152 = arith.addf %149, %151 : vector<2x32xf32>
    %cst_82 = arith.constant 1.000000e+00 : f32
    %153 = vector.broadcast %cst_82 : f32 to vector<2x32xf32>
    %154 = arith.cmpf ogt, %59, %153 : vector<2x32xf32>
    %155 = arith.extui %154 : vector<2x32xi1> to vector<2x32xi32>
    %156 = arith.sitofp %155 : vector<2x32xi32> to vector<2x32xf32>
    %cst_83 = arith.constant 0.904837429 : f32
    %157 = vector.broadcast %cst_83 : f32 to vector<2x32xf32>
    %158 = arith.mulf %157, %59 : vector<2x32xf32>
    %159 = arith.addf %158, %152 : vector<2x32xf32>
    %cst_84 = arith.constant 1.000000e+00 : f32
    %160 = vector.broadcast %cst_84 : f32 to vector<2x32xf32>
    %161 = arith.mulf %156, %160 : vector<2x32xf32>
    %162 = arith.subf %159, %161 : vector<2x32xf32>
    %cst_85 = arith.constant 1.000000e+00 : f32
    %163 = vector.broadcast %cst_85 : f32 to vector<2x32xf32>
    %164 = arith.cmpf ogt, %162, %163 : vector<2x32xf32>
    %165 = arith.extui %164 : vector<2x32xi1> to vector<2x32xi32>
    %166 = arith.sitofp %165 : vector<2x32xi32> to vector<2x32xf32>
    %c0_86 = arith.constant 0 : index
    %c0_87 = arith.constant 0 : index
    %167 = vector.load %arg8[%c0_86, %c0_87] : memref<32x32xf32, #tpu.memory_space<vmem>>, vector<32x32xf32>
    %cst_88 = arith.constant dense<0.000000e+00> : vector<2x32xf32>
    %168 = tpu.matmul %166, %167, %cst_88 {dimension_numbers = #tpu.dot_dimension_numbers<[1], [0], [0], [1], [0, 0, 1, 1], [], []>} : vector<2x32xf32>, vector<32x32xf32>, vector<2x32xf32> -> vector<2x32xf32>
    %c0_89 = arith.constant 0 : index
    %c0_90 = arith.constant 0 : index
    %169 = vector.load %arg9[%c0_89, %c0_90] : memref<1x32xf32, #tpu.memory_space<vmem>>, vector<1x32xf32>
    %170 = vector.broadcast %169 : vector<1x32xf32> to vector<2x32xf32>
    %171 = arith.addf %168, %170 : vector<2x32xf32>
    %cst_91 = arith.constant 1.000000e+00 : f32
    %172 = vector.broadcast %cst_91 : f32 to vector<2x32xf32>
    %173 = arith.cmpf ogt, %78, %172 : vector<2x32xf32>
    %174 = arith.extui %173 : vector<2x32xi1> to vector<2x32xi32>
    %175 = arith.sitofp %174 : vector<2x32xi32> to vector<2x32xf32>
    %cst_92 = arith.constant 0.904837429 : f32
    %176 = vector.broadcast %cst_92 : f32 to vector<2x32xf32>
    %177 = arith.mulf %176, %78 : vector<2x32xf32>
    %178 = arith.addf %177, %171 : vector<2x32xf32>
    %cst_93 = arith.constant 1.000000e+00 : f32
    %179 = vector.broadcast %cst_93 : f32 to vector<2x32xf32>
    %180 = arith.mulf %175, %179 : vector<2x32xf32>
    %181 = arith.subf %178, %180 : vector<2x32xf32>
    %cst_94 = arith.constant 1.000000e+00 : f32
    %182 = vector.broadcast %cst_94 : f32 to vector<2x32xf32>
    %183 = arith.cmpf ogt, %181, %182 : vector<2x32xf32>
    %184 = arith.extui %183 : vector<2x32xi1> to vector<2x32xi32>
    %185 = arith.sitofp %184 : vector<2x32xi32> to vector<2x32xf32>
    %c0_95 = arith.constant 0 : index
    %c0_96 = arith.constant 0 : index
    %186 = vector.load %arg10[%c0_95, %c0_96] : memref<32x11xf32, #tpu.memory_space<vmem>>, vector<32x11xf32>
    %cst_97 = arith.constant dense<0.000000e+00> : vector<2x11xf32>
    %187 = tpu.matmul %185, %186, %cst_97 {dimension_numbers = #tpu.dot_dimension_numbers<[1], [0], [0], [1], [0, 0, 1, 1], [], []>} : vector<2x32xf32>, vector<32x11xf32>, vector<2x11xf32> -> vector<2x11xf32>
    %c0_98 = arith.constant 0 : index
    %c0_99 = arith.constant 0 : index
    %188 = vector.load %arg11[%c0_98, %c0_99] : memref<1x11xf32, #tpu.memory_space<vmem>>, vector<1x11xf32>
    %189 = vector.broadcast %188 : vector<1x11xf32> to vector<2x11xf32>
    %190 = arith.addf %187, %189 : vector<2x11xf32>
    %cst_100 = arith.constant 1.000000e+00 : f32
    %191 = vector.broadcast %cst_100 : f32 to vector<2x11xf32>
    %192 = arith.cmpf ogt, %97, %191 : vector<2x11xf32>
    %193 = arith.extui %192 : vector<2x11xi1> to vector<2x11xi32>
    %194 = arith.sitofp %193 : vector<2x11xi32> to vector<2x11xf32>
    %cst_101 = arith.constant 0.904837429 : f32
    %195 = vector.broadcast %cst_101 : f32 to vector<2x11xf32>
    %196 = arith.mulf %195, %97 : vector<2x11xf32>
    %197 = arith.addf %196, %190 : vector<2x11xf32>
    %cst_102 = arith.constant 1.000000e+00 : f32
    %198 = vector.broadcast %cst_102 : f32 to vector<2x11xf32>
    %199 = arith.mulf %194, %198 : vector<2x11xf32>
    %200 = arith.subf %197, %199 : vector<2x11xf32>
    %cst_103 = arith.constant 1.000000e+00 : f32
    %201 = vector.broadcast %cst_103 : f32 to vector<2x11xf32>
    %202 = arith.cmpf ogt, %200, %201 : vector<2x11xf32>
    %203 = arith.extui %202 : vector<2x11xi1> to vector<2x11xi32>
    %204 = arith.sitofp %203 : vector<2x11xi32> to vector<2x11xf32>
    %c1_104 = arith.constant 1 : index
    %c0_105 = arith.constant 0 : index
    %c0_106 = arith.constant 0 : index
    %205 = vector.load %arg12[%c1_104, %c0_105, %c0_106] : memref<4x2x11xf32, #tpu.memory_space<vmem>>, vector<1x2x11xf32>
    %206 = vector.shape_cast %205 : vector<1x2x11xf32> to vector<2x11xf32>
    %207 = vector.shape_cast %204 : vector<2x11xf32> to vector<1x2x11xf32>
    tpu.vector_store %arg12[%c1_104, %c0_105, %c0_106], %207 {strides = array<i32>} : memref<4x2x11xf32, #tpu.memory_space<vmem>>, vector<1x2x11xf32>,
    %c1_107 = arith.constant 1 : index
    %c0_108 = arith.constant 0 : index
    %c0_109 = arith.constant 0 : index
    %208 = vector.load %arg13[%c1_107, %c0_108, %c0_109] : memref<4x2x11xf32, #tpu.memory_space<vmem>>, vector<1x2x11xf32>
    %209 = vector.shape_cast %208 : vector<1x2x11xf32> to vector<2x11xf32>
    %210 = vector.shape_cast %200 : vector<2x11xf32> to vector<1x2x11xf32>
    tpu.vector_store %arg13[%c1_107, %c0_108, %c0_109], %210 {strides = array<i32>} : memref<4x2x11xf32, #tpu.memory_space<vmem>>, vector<1x2x11xf32>,
    %c2 = arith.constant 2 : index
    %c0_110 = arith.constant 0 : index
    %c0_111 = arith.constant 0 : index
    %211 = vector.load %arg1[%c2, %c0_110, %c0_111] : memref<4x2x200xf32, #tpu.memory_space<vmem>>, vector<1x2x200xf32>
    %212 = vector.shape_cast %211 : vector<1x2x200xf32> to vector<2x200xf32>
    %c0_112 = arith.constant 0 : index
    %c0_113 = arith.constant 0 : index
    %213 = vector.load %arg2[%c0_112, %c0_113] : memref<200x256xf32, #tpu.memory_space<vmem>>, vector<200x256xf32>
    %cst_114 = arith.constant dense<0.000000e+00> : vector<2x256xf32>
    %214 = tpu.matmul %212, %213, %cst_114 {dimension_numbers = #tpu.dot_dimension_numbers<[1], [0], [0], [1], [0, 0, 1, 1], [], []>} : vector<2x200xf32>, vector<200x256xf32>, vector<2x256xf32> -> vector<2x256xf32>
    %c0_115 = arith.constant 0 : index
    %c0_116 = arith.constant 0 : index
    %215 = vector.load %arg3[%c0_115, %c0_116] : memref<1x256xf32, #tpu.memory_space<vmem>>, vector<1x256xf32>
    %216 = vector.broadcast %215 : vector<1x256xf32> to vector<2x256xf32>
    %217 = arith.addf %214, %216 : vector<2x256xf32>
    %cst_117 = arith.constant 1.000000e+00 : f32
    %218 = vector.broadcast %cst_117 : f32 to vector<2x256xf32>
    %219 = arith.cmpf ogt, %124, %218 : vector<2x256xf32>
    %220 = arith.extui %219 : vector<2x256xi1> to vector<2x256xi32>
    %221 = arith.sitofp %220 : vector<2x256xi32> to vector<2x256xf32>
    %cst_118 = arith.constant 0.904837429 : f32
    %222 = vector.broadcast %cst_118 : f32 to vector<2x256xf32>
    %223 = arith.mulf %222, %124 : vector<2x256xf32>
    %224 = arith.addf %223, %217 : vector<2x256xf32>
    %cst_119 = arith.constant 1.000000e+00 : f32
    %225 = vector.broadcast %cst_119 : f32 to vector<2x256xf32>
    %226 = arith.mulf %221, %225 : vector<2x256xf32>
    %227 = arith.subf %224, %226 : vector<2x256xf32>
    %cst_120 = arith.constant 1.000000e+00 : f32
    %228 = vector.broadcast %cst_120 : f32 to vector<2x256xf32>
    %229 = arith.cmpf ogt, %227, %228 : vector<2x256xf32>
    %230 = arith.extui %229 : vector<2x256xi1> to vector<2x256xi32>
    %231 = arith.sitofp %230 : vector<2x256xi32> to vector<2x256xf32>
    %c0_121 = arith.constant 0 : index
    %c0_122 = arith.constant 0 : index
    %232 = vector.load %arg4[%c0_121, %c0_122] : memref<256x216xf32, #tpu.memory_space<vmem>>, vector<256x216xf32>
    %cst_123 = arith.constant dense<0.000000e+00> : vector<2x216xf32>
    %233 = tpu.matmul %231, %232, %cst_123 {dimension_numbers = #tpu.dot_dimension_numbers<[1], [0], [0], [1], [0, 0, 1, 1], [], []>} : vector<2x256xf32>, vector<256x216xf32>, vector<2x216xf32> -> vector<2x216xf32>
    %c0_124 = arith.constant 0 : index
    %c0_125 = arith.constant 0 : index
    %234 = vector.load %arg5[%c0_124, %c0_125] : memref<1x216xf32, #tpu.memory_space<vmem>>, vector<1x216xf32>
    %235 = vector.broadcast %234 : vector<1x216xf32> to vector<2x216xf32>
    %236 = arith.addf %233, %235 : vector<2x216xf32>
    %cst_126 = arith.constant 1.000000e+00 : f32
    %237 = vector.broadcast %cst_126 : f32 to vector<2x216xf32>
    %238 = arith.cmpf ogt, %143, %237 : vector<2x216xf32>
    %239 = arith.extui %238 : vector<2x216xi1> to vector<2x216xi32>
    %240 = arith.sitofp %239 : vector<2x216xi32> to vector<2x216xf32>
    %cst_127 = arith.constant 0.904837429 : f32
    %241 = vector.broadcast %cst_127 : f32 to vector<2x216xf32>
    %242 = arith.mulf %241, %143 : vector<2x216xf32>
    %243 = arith.addf %242, %236 : vector<2x216xf32>
    %cst_128 = arith.constant 1.000000e+00 : f32
    %244 = vector.broadcast %cst_128 : f32 to vector<2x216xf32>
    %245 = arith.mulf %240, %244 : vector<2x216xf32>
    %246 = arith.subf %243, %245 : vector<2x216xf32>
    %cst_129 = arith.constant 1.000000e+00 : f32
    %247 = vector.broadcast %cst_129 : f32 to vector<2x216xf32>
    %248 = arith.cmpf ogt, %246, %247 : vector<2x216xf32>
    %249 = arith.extui %248 : vector<2x216xi1> to vector<2x216xi32>
    %250 = arith.sitofp %249 : vector<2x216xi32> to vector<2x216xf32>
    %c0_130 = arith.constant 0 : index
    %c0_131 = arith.constant 0 : index
    %251 = vector.load %arg6[%c0_130, %c0_131] : memref<216x32xf32, #tpu.memory_space<vmem>>, vector<216x32xf32>
    %cst_132 = arith.constant dense<0.000000e+00> : vector<2x32xf32>
    %252 = tpu.matmul %250, %251, %cst_132 {dimension_numbers = #tpu.dot_dimension_numbers<[1], [0], [0], [1], [0, 0, 1, 1], [], []>} : vector<2x216xf32>, vector<216x32xf32>, vector<2x32xf32> -> vector<2x32xf32>
    %c0_133 = arith.constant 0 : index
    %c0_134 = arith.constant 0 : index
    %253 = vector.load %arg7[%c0_133, %c0_134] : memref<1x32xf32, #tpu.memory_space<vmem>>, vector<1x32xf32>
    %254 = vector.broadcast %253 : vector<1x32xf32> to vector<2x32xf32>
    %255 = arith.addf %252, %254 : vector<2x32xf32>
    %cst_135 = arith.constant 1.000000e+00 : f32
    %256 = vector.broadcast %cst_135 : f32 to vector<2x32xf32>
    %257 = arith.cmpf ogt, %162, %256 : vector<2x32xf32>
    %258 = arith.extui %257 : vector<2x32xi1> to vector<2x32xi32>
    %259 = arith.sitofp %258 : vector<2x32xi32> to vector<2x32xf32>
    %cst_136 = arith.constant 0.904837429 : f32
    %260 = vector.broadcast %cst_136 : f32 to vector<2x32xf32>
    %261 = arith.mulf %260, %162 : vector<2x32xf32>
    %262 = arith.addf %261, %255 : vector<2x32xf32>
    %cst_137 = arith.constant 1.000000e+00 : f32
    %263 = vector.broadcast %cst_137 : f32 to vector<2x32xf32>
    %264 = arith.mulf %259, %263 : vector<2x32xf32>
    %265 = arith.subf %262, %264 : vector<2x32xf32>
    %cst_138 = arith.constant 1.000000e+00 : f32
    %266 = vector.broadcast %cst_138 : f32 to vector<2x32xf32>
    %267 = arith.cmpf ogt, %265, %266 : vector<2x32xf32>
    %268 = arith.extui %267 : vector<2x32xi1> to vector<2x32xi32>
    %269 = arith.sitofp %268 : vector<2x32xi32> to vector<2x32xf32>
    %c0_139 = arith.constant 0 : index
    %c0_140 = arith.constant 0 : index
    %270 = vector.load %arg8[%c0_139, %c0_140] : memref<32x32xf32, #tpu.memory_space<vmem>>, vector<32x32xf32>
    %cst_141 = arith.constant dense<0.000000e+00> : vector<2x32xf32>
    %271 = tpu.matmul %269, %270, %cst_141 {dimension_numbers = #tpu.dot_dimension_numbers<[1], [0], [0], [1], [0, 0, 1, 1], [], []>} : vector<2x32xf32>, vector<32x32xf32>, vector<2x32xf32> -> vector<2x32xf32>
    %c0_142 = arith.constant 0 : index
    %c0_143 = arith.constant 0 : index
    %272 = vector.load %arg9[%c0_142, %c0_143] : memref<1x32xf32, #tpu.memory_space<vmem>>, vector<1x32xf32>
    %273 = vector.broadcast %272 : vector<1x32xf32> to vector<2x32xf32>
    %274 = arith.addf %271, %273 : vector<2x32xf32>
    %cst_144 = arith.constant 1.000000e+00 : f32
    %275 = vector.broadcast %cst_144 : f32 to vector<2x32xf32>
    %276 = arith.cmpf ogt, %181, %275 : vector<2x32xf32>
    %277 = arith.extui %276 : vector<2x32xi1> to vector<2x32xi32>
    %278 = arith.sitofp %277 : vector<2x32xi32> to vector<2x32xf32>
    %cst_145 = arith.constant 0.904837429 : f32
    %279 = vector.broadcast %cst_145 : f32 to vector<2x32xf32>
    %280 = arith.mulf %279, %181 : vector<2x32xf32>
    %281 = arith.addf %280, %274 : vector<2x32xf32>
    %cst_146 = arith.constant 1.000000e+00 : f32
    %282 = vector.broadcast %cst_146 : f32 to vector<2x32xf32>
    %283 = arith.mulf %278, %282 : vector<2x32xf32>
    %284 = arith.subf %281, %283 : vector<2x32xf32>
    %cst_147 = arith.constant 1.000000e+00 : f32
    %285 = vector.broadcast %cst_147 : f32 to vector<2x32xf32>
    %286 = arith.cmpf ogt, %284, %285 : vector<2x32xf32>
    %287 = arith.extui %286 : vector<2x32xi1> to vector<2x32xi32>
    %288 = arith.sitofp %287 : vector<2x32xi32> to vector<2x32xf32>
    %c0_148 = arith.constant 0 : index
    %c0_149 = arith.constant 0 : index
    %289 = vector.load %arg10[%c0_148, %c0_149] : memref<32x11xf32, #tpu.memory_space<vmem>>, vector<32x11xf32>
    %cst_150 = arith.constant dense<0.000000e+00> : vector<2x11xf32>
    %290 = tpu.matmul %288, %289, %cst_150 {dimension_numbers = #tpu.dot_dimension_numbers<[1], [0], [0], [1], [0, 0, 1, 1], [], []>} : vector<2x32xf32>, vector<32x11xf32>, vector<2x11xf32> -> vector<2x11xf32>
    %c0_151 = arith.constant 0 : index
    %c0_152 = arith.constant 0 : index
    %291 = vector.load %arg11[%c0_151, %c0_152] : memref<1x11xf32, #tpu.memory_space<vmem>>, vector<1x11xf32>
    %292 = vector.broadcast %291 : vector<1x11xf32> to vector<2x11xf32>
    %293 = arith.addf %290, %292 : vector<2x11xf32>
    %cst_153 = arith.constant 1.000000e+00 : f32
    %294 = vector.broadcast %cst_153 : f32 to vector<2x11xf32>
    %295 = arith.cmpf ogt, %200, %294 : vector<2x11xf32>
    %296 = arith.extui %295 : vector<2x11xi1> to vector<2x11xi32>
    %297 = arith.sitofp %296 : vector<2x11xi32> to vector<2x11xf32>
    %cst_154 = arith.constant 0.904837429 : f32
    %298 = vector.broadcast %cst_154 : f32 to vector<2x11xf32>
    %299 = arith.mulf %298, %200 : vector<2x11xf32>
    %300 = arith.addf %299, %293 : vector<2x11xf32>
    %cst_155 = arith.constant 1.000000e+00 : f32
    %301 = vector.broadcast %cst_155 : f32 to vector<2x11xf32>
    %302 = arith.mulf %297, %301 : vector<2x11xf32>
    %303 = arith.subf %300, %302 : vector<2x11xf32>
    %cst_156 = arith.constant 1.000000e+00 : f32
    %304 = vector.broadcast %cst_156 : f32 to vector<2x11xf32>
    %305 = arith.cmpf ogt, %303, %304 : vector<2x11xf32>
    %306 = arith.extui %305 : vector<2x11xi1> to vector<2x11xi32>
    %307 = arith.sitofp %306 : vector<2x11xi32> to vector<2x11xf32>
    %c2_157 = arith.constant 2 : index
    %c0_158 = arith.constant 0 : index
    %c0_159 = arith.constant 0 : index
    %308 = vector.load %arg12[%c2_157, %c0_158, %c0_159] : memref<4x2x11xf32, #tpu.memory_space<vmem>>, vector<1x2x11xf32>
    %309 = vector.shape_cast %308 : vector<1x2x11xf32> to vector<2x11xf32>
    %310 = vector.shape_cast %307 : vector<2x11xf32> to vector<1x2x11xf32>
    tpu.vector_store %arg12[%c2_157, %c0_158, %c0_159], %310 {strides = array<i32>} : memref<4x2x11xf32, #tpu.memory_space<vmem>>, vector<1x2x11xf32>,
    %c2_160 = arith.constant 2 : index
    %c0_161 = arith.constant 0 : index
    %c0_162 = arith.constant 0 : index
    %311 = vector.load %arg13[%c2_160, %c0_161, %c0_162] : memref<4x2x11xf32, #tpu.memory_space<vmem>>, vector<1x2x11xf32>
    %312 = vector.shape_cast %311 : vector<1x2x11xf32> to vector<2x11xf32>
    %313 = vector.shape_cast %303 : vector<2x11xf32> to vector<1x2x11xf32>
    tpu.vector_store %arg13[%c2_160, %c0_161, %c0_162], %313 {strides = array<i32>} : memref<4x2x11xf32, #tpu.memory_space<vmem>>, vector<1x2x11xf32>,
    %c3 = arith.constant 3 : index
    %c0_163 = arith.constant 0 : index
    %c0_164 = arith.constant 0 : index
    %314 = vector.load %arg1[%c3, %c0_163, %c0_164] : memref<4x2x200xf32, #tpu.memory_space<vmem>>, vector<1x2x200xf32>
    %315 = vector.shape_cast %314 : vector<1x2x200xf32> to vector<2x200xf32>
    %c0_165 = arith.constant 0 : index
    %c0_166 = arith.constant 0 : index
    %316 = vector.load %arg2[%c0_165, %c0_166] : memref<200x256xf32, #tpu.memory_space<vmem>>, vector<200x256xf32>
    %cst_167 = arith.constant dense<0.000000e+00> : vector<2x256xf32>
    %317 = tpu.matmul %315, %316, %cst_167 {dimension_numbers = #tpu.dot_dimension_numbers<[1], [0], [0], [1], [0, 0, 1, 1], [], []>} : vector<2x200xf32>, vector<200x256xf32>, vector<2x256xf32> -> vector<2x256xf32>
    %c0_168 = arith.constant 0 : index
    %c0_169 = arith.constant 0 : index
    %318 = vector.load %arg3[%c0_168, %c0_169] : memref<1x256xf32, #tpu.memory_space<vmem>>, vector<1x256xf32>
    %319 = vector.broadcast %318 : vector<1x256xf32> to vector<2x256xf32>
    %320 = arith.addf %317, %319 : vector<2x256xf32>
    %cst_170 = arith.constant 1.000000e+00 : f32
    %321 = vector.broadcast %cst_170 : f32 to vector<2x256xf32>
    %322 = arith.cmpf ogt, %227, %321 : vector<2x256xf32>
    %323 = arith.extui %322 : vector<2x256xi1> to vector<2x256xi32>
    %324 = arith.sitofp %323 : vector<2x256xi32> to vector<2x256xf32>
    %cst_171 = arith.constant 0.904837429 : f32
    %325 = vector.broadcast %cst_171 : f32 to vector<2x256xf32>
    %326 = arith.mulf %325, %227 : vector<2x256xf32>
    %327 = arith.addf %326, %320 : vector<2x256xf32>
    %cst_172 = arith.constant 1.000000e+00 : f32
    %328 = vector.broadcast %cst_172 : f32 to vector<2x256xf32>
    %329 = arith.mulf %324, %328 : vector<2x256xf32>
    %330 = arith.subf %327, %329 : vector<2x256xf32>
    %cst_173 = arith.constant 1.000000e+00 : f32
    %331 = vector.broadcast %cst_173 : f32 to vector<2x256xf32>
    %332 = arith.cmpf ogt, %330, %331 : vector<2x256xf32>
    %333 = arith.extui %332 : vector<2x256xi1> to vector<2x256xi32>
    %334 = arith.sitofp %333 : vector<2x256xi32> to vector<2x256xf32>
    %c0_174 = arith.constant 0 : index
    %c0_175 = arith.constant 0 : index
    %335 = vector.load %arg4[%c0_174, %c0_175] : memref<256x216xf32, #tpu.memory_space<vmem>>, vector<256x216xf32>
    %cst_176 = arith.constant dense<0.000000e+00> : vector<2x216xf32>
    %336 = tpu.matmul %334, %335, %cst_176 {dimension_numbers = #tpu.dot_dimension_numbers<[1], [0], [0], [1], [0, 0, 1, 1], [], []>} : vector<2x256xf32>, vector<256x216xf32>, vector<2x216xf32> -> vector<2x216xf32>
    %c0_177 = arith.constant 0 : index
    %c0_178 = arith.constant 0 : index
    %337 = vector.load %arg5[%c0_177, %c0_178] : memref<1x216xf32, #tpu.memory_space<vmem>>, vector<1x216xf32>
    %338 = vector.broadcast %337 : vector<1x216xf32> to vector<2x216xf32>
    %339 = arith.addf %336, %338 : vector<2x216xf32>
    %cst_179 = arith.constant 1.000000e+00 : f32
    %340 = vector.broadcast %cst_179 : f32 to vector<2x216xf32>
    %341 = arith.cmpf ogt, %246, %340 : vector<2x216xf32>
    %342 = arith.extui %341 : vector<2x216xi1> to vector<2x216xi32>
    %343 = arith.sitofp %342 : vector<2x216xi32> to vector<2x216xf32>
    %cst_180 = arith.constant 0.904837429 : f32
    %344 = vector.broadcast %cst_180 : f32 to vector<2x216xf32>
    %345 = arith.mulf %344, %246 : vector<2x216xf32>
    %346 = arith.addf %345, %339 : vector<2x216xf32>
    %cst_181 = arith.constant 1.000000e+00 : f32
    %347 = vector.broadcast %cst_181 : f32 to vector<2x216xf32>
    %348 = arith.mulf %343, %347 : vector<2x216xf32>
    %349 = arith.subf %346, %348 : vector<2x216xf32>
    %cst_182 = arith.constant 1.000000e+00 : f32
    %350 = vector.broadcast %cst_182 : f32 to vector<2x216xf32>
    %351 = arith.cmpf ogt, %349, %350 : vector<2x216xf32>
    %352 = arith.extui %351 : vector<2x216xi1> to vector<2x216xi32>
    %353 = arith.sitofp %352 : vector<2x216xi32> to vector<2x216xf32>
    %c0_183 = arith.constant 0 : index
    %c0_184 = arith.constant 0 : index
    %354 = vector.load %arg6[%c0_183, %c0_184] : memref<216x32xf32, #tpu.memory_space<vmem>>, vector<216x32xf32>
    %cst_185 = arith.constant dense<0.000000e+00> : vector<2x32xf32>
    %355 = tpu.matmul %353, %354, %cst_185 {dimension_numbers = #tpu.dot_dimension_numbers<[1], [0], [0], [1], [0, 0, 1, 1], [], []>} : vector<2x216xf32>, vector<216x32xf32>, vector<2x32xf32> -> vector<2x32xf32>
    %c0_186 = arith.constant 0 : index
    %c0_187 = arith.constant 0 : index
    %356 = vector.load %arg7[%c0_186, %c0_187] : memref<1x32xf32, #tpu.memory_space<vmem>>, vector<1x32xf32>
    %357 = vector.broadcast %356 : vector<1x32xf32> to vector<2x32xf32>
    %358 = arith.addf %355, %357 : vector<2x32xf32>
    %cst_188 = arith.constant 1.000000e+00 : f32
    %359 = vector.broadcast %cst_188 : f32 to vector<2x32xf32>
    %360 = arith.cmpf ogt, %265, %359 : vector<2x32xf32>
    %361 = arith.extui %360 : vector<2x32xi1> to vector<2x32xi32>
    %362 = arith.sitofp %361 : vector<2x32xi32> to vector<2x32xf32>
    %cst_189 = arith.constant 0.904837429 : f32
    %363 = vector.broadcast %cst_189 : f32 to vector<2x32xf32>
    %364 = arith.mulf %363, %265 : vector<2x32xf32>
    %365 = arith.addf %364, %358 : vector<2x32xf32>
    %cst_190 = arith.constant 1.000000e+00 : f32
    %366 = vector.broadcast %cst_190 : f32 to vector<2x32xf32>
    %367 = arith.mulf %362, %366 : vector<2x32xf32>
    %368 = arith.subf %365, %367 : vector<2x32xf32>
    %cst_191 = arith.constant 1.000000e+00 : f32
    %369 = vector.broadcast %cst_191 : f32 to vector<2x32xf32>
    %370 = arith.cmpf ogt, %368, %369 : vector<2x32xf32>
    %371 = arith.extui %370 : vector<2x32xi1> to vector<2x32xi32>
    %372 = arith.sitofp %371 : vector<2x32xi32> to vector<2x32xf32>
    %c0_192 = arith.constant 0 : index
    %c0_193 = arith.constant 0 : index
    %373 = vector.load %arg8[%c0_192, %c0_193] : memref<32x32xf32, #tpu.memory_space<vmem>>, vector<32x32xf32>
    %cst_194 = arith.constant dense<0.000000e+00> : vector<2x32xf32>
    %374 = tpu.matmul %372, %373, %cst_194 {dimension_numbers = #tpu.dot_dimension_numbers<[1], [0], [0], [1], [0, 0, 1, 1], [], []>} : vector<2x32xf32>, vector<32x32xf32>, vector<2x32xf32> -> vector<2x32xf32>
    %c0_195 = arith.constant 0 : index
    %c0_196 = arith.constant 0 : index
    %375 = vector.load %arg9[%c0_195, %c0_196] : memref<1x32xf32, #tpu.memory_space<vmem>>, vector<1x32xf32>
    %376 = vector.broadcast %375 : vector<1x32xf32> to vector<2x32xf32>
    %377 = arith.addf %374, %376 : vector<2x32xf32>
    %cst_197 = arith.constant 1.000000e+00 : f32
    %378 = vector.broadcast %cst_197 : f32 to vector<2x32xf32>
    %379 = arith.cmpf ogt, %284, %378 : vector<2x32xf32>
    %380 = arith.extui %379 : vector<2x32xi1> to vector<2x32xi32>
    %381 = arith.sitofp %380 : vector<2x32xi32> to vector<2x32xf32>
    %cst_198 = arith.constant 0.904837429 : f32
    %382 = vector.broadcast %cst_198 : f32 to vector<2x32xf32>
    %383 = arith.mulf %382, %284 : vector<2x32xf32>
    %384 = arith.addf %383, %377 : vector<2x32xf32>
    %cst_199 = arith.constant 1.000000e+00 : f32
    %385 = vector.broadcast %cst_199 : f32 to vector<2x32xf32>
    %386 = arith.mulf %381, %385 : vector<2x32xf32>
    %387 = arith.subf %384, %386 : vector<2x32xf32>
    %cst_200 = arith.constant 1.000000e+00 : f32
    %388 = vector.broadcast %cst_200 : f32 to vector<2x32xf32>
    %389 = arith.cmpf ogt, %387, %388 : vector<2x32xf32>
    %390 = arith.extui %389 : vector<2x32xi1> to vector<2x32xi32>
    %391 = arith.sitofp %390 : vector<2x32xi32> to vector<2x32xf32>
    %c0_201 = arith.constant 0 : index
    %c0_202 = arith.constant 0 : index
    %392 = vector.load %arg10[%c0_201, %c0_202] : memref<32x11xf32, #tpu.memory_space<vmem>>, vector<32x11xf32>
    %cst_203 = arith.constant dense<0.000000e+00> : vector<2x11xf32>
    %393 = tpu.matmul %391, %392, %cst_203 {dimension_numbers = #tpu.dot_dimension_numbers<[1], [0], [0], [1], [0, 0, 1, 1], [], []>} : vector<2x32xf32>, vector<32x11xf32>, vector<2x11xf32> -> vector<2x11xf32>
    %c0_204 = arith.constant 0 : index
    %c0_205 = arith.constant 0 : index
    %394 = vector.load %arg11[%c0_204, %c0_205] : memref<1x11xf32, #tpu.memory_space<vmem>>, vector<1x11xf32>
    %395 = vector.broadcast %394 : vector<1x11xf32> to vector<2x11xf32>
    %396 = arith.addf %393, %395 : vector<2x11xf32>
    %cst_206 = arith.constant 1.000000e+00 : f32
    %397 = vector.broadcast %cst_206 : f32 to vector<2x11xf32>
    %398 = arith.cmpf ogt, %303, %397 : vector<2x11xf32>
    %399 = arith.extui %398 : vector<2x11xi1> to vector<2x11xi32>
    %400 = arith.sitofp %399 : vector<2x11xi32> to vector<2x11xf32>
    %cst_207 = arith.constant 0.904837429 : f32
    %401 = vector.broadcast %cst_207 : f32 to vector<2x11xf32>
    %402 = arith.mulf %401, %303 : vector<2x11xf32>
    %403 = arith.addf %402, %396 : vector<2x11xf32>
    %cst_208 = arith.constant 1.000000e+00 : f32
    %404 = vector.broadcast %cst_208 : f32 to vector<2x11xf32>
    %405 = arith.mulf %400, %404 : vector<2x11xf32>
    %406 = arith.subf %403, %405 : vector<2x11xf32>
    %cst_209 = arith.constant 1.000000e+00 : f32
    %407 = vector.broadcast %cst_209 : f32 to vector<2x11xf32>
    %408 = arith.cmpf ogt, %406, %407 : vector<2x11xf32>
    %409 = arith.extui %408 : vector<2x11xi1> to vector<2x11xi32>
    %410 = arith.sitofp %409 : vector<2x11xi32> to vector<2x11xf32>
    %c3_210 = arith.constant 3 : index
    %c0_211 = arith.constant 0 : index
    %c0_212 = arith.constant 0 : index
    %411 = vector.load %arg12[%c3_210, %c0_211, %c0_212] : memref<4x2x11xf32, #tpu.memory_space<vmem>>, vector<1x2x11xf32>
    %412 = vector.shape_cast %411 : vector<1x2x11xf32> to vector<2x11xf32>
    %413 = vector.shape_cast %410 : vector<2x11xf32> to vector<1x2x11xf32>
    tpu.vector_store %arg12[%c3_210, %c0_211, %c0_212], %413 {strides = array<i32>} : memref<4x2x11xf32, #tpu.memory_space<vmem>>, vector<1x2x11xf32>,
    %c3_213 = arith.constant 3 : index
    %c0_214 = arith.constant 0 : index
    %c0_215 = arith.constant 0 : index
    %414 = vector.load %arg13[%c3_213, %c0_214, %c0_215] : memref<4x2x11xf32, #tpu.memory_space<vmem>>, vector<1x2x11xf32>
    %415 = vector.shape_cast %414 : vector<1x2x11xf32> to vector<2x11xf32>
    %416 = vector.shape_cast %406 : vector<2x11xf32> to vector<1x2x11xf32>
    tpu.vector_store %arg13[%c3_213, %c0_214, %c0_215], %416 {strides = array<i32>} : memref<4x2x11xf32, #tpu.memory_space<vmem>>, vector<1x2x11xf32>,
    return
  }
  func.func @transform_0(%arg0: i32) -> (i32, i32, i32) {
    %c0_i32 = arith.constant 0 : i32
    %c0_i32_0 = arith.constant 0 : i32
    %c0_i32_1 = arith.constant 0 : i32
    %c0_i32_2 = arith.constant 0 : i32
    return %c0_i32, %c0_i32_0, %c0_i32_1 : i32, i32, i32
  }
  func.func @transform_1(%arg0: i32) -> (i32, i32) {
    %c0_i32 = arith.constant 0 : i32
    %c0_i32_0 = arith.constant 0 : i32
    %c0_i32_1 = arith.constant 0 : i32
    return %c0_i32, %c0_i32_0 : i32, i32
  }
  func.func @transform_2(%arg0: i32) -> (i32, i32) {
    %c0_i32 = arith.constant 0 : i32
    %c0_i32_0 = arith.constant 0 : i32
    %c0_i32_1 = arith.constant 0 : i32
    return %c0_i32, %c0_i32_0 : i32, i32
  }
  func.func @transform_3(%arg0: i32) -> (i32, i32) {
    %c0_i32 = arith.constant 0 : i32
    %c0_i32_0 = arith.constant 0 : i32
    %c0_i32_1 = arith.constant 0 : i32
    return %c0_i32, %c0_i32_0 : i32, i32
  }
  func.func @transform_4(%arg0: i32) -> (i32, i32) {
    %c0_i32 = arith.constant 0 : i32
    %c0_i32_0 = arith.constant 0 : i32
    %c0_i32_1 = arith.constant 0 : i32
    return %c0_i32, %c0_i32_0 : i32, i32
  }
  func.func @transform_5(%arg0: i32) -> (i32, i32) {
    %c0_i32 = arith.constant 0 : i32
    %c0_i32_0 = arith.constant 0 : i32
    %c0_i32_1 = arith.constant 0 : i32
    return %c0_i32, %c0_i32_0 : i32, i32
  }
  func.func @transform_6(%arg0: i32) -> (i32, i32) {
    %c0_i32 = arith.constant 0 : i32
    %c0_i32_0 = arith.constant 0 : i32
    %c0_i32_1 = arith.constant 0 : i32
    return %c0_i32, %c0_i32_0 : i32, i32
  }
  func.func @transform_7(%arg0: i32) -> (i32, i32) {
    %c0_i32 = arith.constant 0 : i32
    %c0_i32_0 = arith.constant 0 : i32
    %c0_i32_1 = arith.constant 0 : i32
    return %c0_i32, %c0_i32_0 : i32, i32
  }
  func.func @transform_8(%arg0: i32) -> (i32, i32) {
    %c0_i32 = arith.constant 0 : i32
    %c0_i32_0 = arith.constant 0 : i32
    %c0_i32_1 = arith.constant 0 : i32
    return %c0_i32, %c0_i32_0 : i32, i32
  }
  func.func @transform_9(%arg0: i32) -> (i32, i32) {
    %c0_i32 = arith.constant 0 : i32
    %c0_i32_0 = arith.constant 0 : i32
    %c0_i32_1 = arith.constant 0 : i32
    return %c0_i32, %c0_i32_0 : i32, i32
  }
  func.func @transform_10(%arg0: i32) -> (i32, i32) {
    %c0_i32 = arith.constant 0 : i32
    %c0_i32_0 = arith.constant 0 : i32
    %c0_i32_1 = arith.constant 0 : i32
    return %c0_i32, %c0_i32_0 : i32, i32
  }
  func.func @transform_11(%arg0: i32) -> (i32, i32, i32) {
    %c0_i32 = arith.constant 0 : i32
    %c0_i32_0 = arith.constant 0 : i32
    %c0_i32_1 = arith.constant 0 : i32
    %c0_i32_2 = arith.constant 0 : i32
    return %c0_i32, %c0_i32_0, %c0_i32_1 : i32, i32, i32
  }
  func.func @transform_12(%arg0: i32) -> (i32, i32, i32) {
    %c0_i32 = arith.constant 0 : i32
    %c0_i32_0 = arith.constant 0 : i32
    %c0_i32_1 = arith.constant 0 : i32
    %c0_i32_2 = arith.constant 0 : i32
    return %c0_i32, %c0_i32_0, %c0_i32_1 : i32, i32, i32
  }
}

</mosaic_0001>

<bundles_post_ra>
// kernel: sc_forward.1
= control target key start
LH: loop header
LB: loop body
LE: loop exit
PB: predicated region body
PF: predicated region fallthrough
CT: control target
= control target key end

     0   :  { %18 = vsyncpa [#allocation3], 0  ;;  %vm115_vm0 = vcmask 588800   ;;  %s5476_s0 = inlined_call_operand.vmem [shape: f32[4,2,200], index: 0, kind: input, shape index: {}]   ;;  %s5477_s1 = inlined_call_operand.vmem [shape: f32[200,256], index: 1, kind: input, shape index: {}]   ;;  %s5478_s2 = inlined_call_operand.vmem [shape: f32[1,256], index: 2, kind: input, shape index: {}]   ;;  %s5479_s3 = inlined_call_operand.vmem [shape: f32[256,216], index: 3, kind: input, shape index: {}]   ;;  %s5480_s4 = inlined_call_operand.vmem [shape: f32[1,216], index: 4, kind: input, shape index: {}]   ;;  %s5481_s5 = inlined_call_operand.vmem [shape: f32[216,32], index: 5, kind: input, shape index: {}]   ;;  %s5482_s6 = inlined_call_operand.vmem [shape: f32[1,32], index: 6, kind: input, shape index: {}]   ;;  %s5483_s7 = inlined_call_operand.vmem [shape: f32[32,32], index: 7, kind: input, shape index: {}]   ;;  %s5484_s8 = inlined_call_operand.vmem [shape: f32[1,32], index: 8, kind: input, shape index: {}]   ;;  %s5485_s9 = inlined_call_operand.vmem [shape: f32[32,11], index: 9, kind: input, shape index: {}]   ;;  %s5486_s10 = inlined_call_operand.vmem [shape: f32[1,11], index: 10, kind: input, shape index: {}]   ;;  %s5487_s11 = inlined_call_operand.hbm [shape: f32[4,2,11], index: 11, kind: output, shape index: {0}]   ;;  %s5488_s12 = inlined_call_operand.hbm [shape: f32[4,2,11], index: 12, kind: output, shape index: {1}]  }
   0x1   :  { %v44_v0 = vld [vmem:[%s5477_s1 + $0x8] sm:$0xff]  ;;  %v46_v1 = vld [vmem:[%s5477_s1 + $0x18] sm:$0xff]  ;;  %v43_v2 = vld [vmem:[%s5477_s1] sm:$0xff] }
   0x2   :  { %v3524_v3 = vpack.c.bf16 %v46_v1, %v44_v0  ;;  %v45_v4 = vld [vmem:[%s5477_s1 + $0x10] sm:$0xff]  ;;  %v48_v5 = vld [vmem:[%s5477_s1 + $0x28] sm:$0xff]  ;;  %v50_v6 = vld [vmem:[%s5477_s1 + $0x38] sm:$0xff] }
   0x3   :  { %v3535_v7 = vpack.c.bf16 %v45_v4, %v43_v2  ;;  %v3537_v8 = vpack.c.bf16 %v50_v6, %v48_v5  ;;  %v47_v9 = vld [vmem:[%s5477_s1 + $0x20] sm:$0xff]  ;;  %v49_v10 = vld [vmem:[%s5477_s1 + $0x30] sm:$0xff]  ;;  %v52_v11 = vld [vmem:[%s5477_s1 + $0x48] sm:$0xff] }
   0x4   :  { %2735 = vmatprep.subr.bf16.mxu0 %v3524_v3  ;;  %v54_v12 = vld [vmem:[%s5477_s1 + $0x58] sm:$0xff]  ;;  %v3553_v13 = vpack.c.bf16 %v49_v10, %v47_v9  ;;  %v51_v15 = vld [vmem:[%s5477_s1 + $0x40] sm:$0xff]  ;;  %v53_v16 = vld [vmem:[%s5477_s1 + $0x50] sm:$0xff] }
   0x5   :  { %2737 = vmatpush1.bf16.msra.mxu0 %v3535_v7  ;;  %v3556_v14 = vpack.c.bf16 %v54_v12, %v52_v11  ;;  %v56_v17 = vld [vmem:[%s5477_s1 + $0x68] sm:$0xff]  ;;  %v58_v18 = vld [vmem:[%s5477_s1 + $0x78] sm:$0xff]  ;;  %v3571_v19 = vpack.c.bf16 %v53_v16, %v51_v15  ;;  %v55_v21 = vld [vmem:[%s5477_s1 + $0x60] sm:$0xff] }
   0x6   :  { %2739 = vmatprep.subr.bf16.mxu0 %v3537_v8  ;;  %v3574_v20 = vpack.c.bf16 %v58_v18, %v56_v17  ;;  %v57_v22 = vld [vmem:[%s5477_s1 + $0x70] sm:$0xff]  ;;  %v60_v23 = vld [vmem:[%s5477_s1 + $0x88] sm:$0xff]  ;;  %v62_v24 = vld [vmem:[%s5477_s1 + $0x98] sm:$0xff] }
   0x7   :  { %v3589_v25 = vpack.c.bf16 %v57_v22, %v55_v21  ;;  %v3592_v26 = vpack.c.bf16 %v62_v24, %v60_v23  ;;  %v59_v27 = vld [vmem:[%s5477_s1 + $0x80] sm:$0xff]  ;;  %v61_v28 = vld [vmem:[%s5477_s1 + $0x90] sm:$0xff]  ;;  %v64_v29 = vld [vmem:[%s5477_s1 + $0xa8] sm:$0xff] }
   0x8   :  { %v66_v30 = vld [vmem:[%s5477_s1 + $0xb8] sm:$0xff]  ;;  %v63_v31 = vld [vmem:[%s5477_s1 + $0xa0] sm:$0xff]  ;;  %v65_v32 = vld [vmem:[%s5477_s1 + $0xb0] sm:$0xff]  ;;  %v3613_v33 = vpack.c.bf16 %v61_v28, %v59_v27 }
   0x9   :  { %2741 = vmatpush1.bf16.msra.mxu0 %v3553_v13  ;;  %v68_v34 = vld [vmem:[%s5477_s1 + $0xc8] sm:$0xff]  ;;  %v70_v35 = vld [vmem:[%s5477_s1 + $0xd8] sm:$0xff]  ;;  %v3624_v36 = vld.sshfl [vmem:[%s5476_s0] sm:$0x33 pattern:$0x76325410]  ;;  %v3627_v37 = vpack.c.bf16 %v66_v30, %v64_v29  ;;  %v3666_v51 = vpack.c.bf16 %v65_v32, %v63_v31 }
   0xa   :  { %2743 = vmatprep.subr.bf16.mxu0 %v3556_v14  ;;  %v113_v38 = vcombine.high %v3624_v36, %v3624_v36  ;;  %v203_v39 = vld [vmem:[%s5479_s3 + $0x8] sm:$0xff]  ;;  %v205_v40 = vld [vmem:[%s5479_s3 + $0x18] sm:$0xff]  ;;  %v202_v41 = vld [vmem:[%s5479_s3] sm:$0xff]  ;;  %v3673_v53 = vpack.c.bf16 %v70_v35, %v68_v34 }
   0xb   :  { %v3640_v42 = vpack.c.bf16 %v205_v40, %v203_v39  ;;  %v204_v43 = vld [vmem:[%s5479_s3 + $0x10] sm:$0xff]  ;;  %v207_v44 = vld [vmem:[%s5479_s3 + $0x28] sm:$0xff]  ;;  %v209_v45 = vld [vmem:[%s5479_s3 + $0x38] sm:$0xff] }
   0xc   :  { %2532 = vmatprep.mubr.msk.f32.mxu0 %vm115_vm0, %v113_v38  ;;  %v3652_v46 = vpack.c.bf16 %v204_v43, %v202_v41  ;;  %v3654_v47 = vpack.c.bf16 %v209_v45, %v207_v44  ;;  %v206_v48 = vld [vmem:[%s5479_s3 + $0x20] sm:$0xff]  ;;  %v208_v49 = vld [vmem:[%s5479_s3 + $0x30] sm:$0xff]  ;;  %v211_v50 = vld [vmem:[%s5479_s3 + $0x48] sm:$0xff] }
   0xd   :  { %2745 = vmatpush1.bf16.msra.mxu0 %v3571_v19  ;;  %2783 = vmatprep.subr.bf16.mxu1 %v3640_v42  ;;  %v213_v52 = vld [vmem:[%s5479_s3 + $0x58] sm:$0xff]  ;;  %v67_v54 = vld [vmem:[%s5477_s1 + $0xc0] sm:$0xff]  ;;  %v69_v55 = vld [vmem:[%s5477_s1 + $0xd0] sm:$0xff]  ;;  %v3685_v57 = vpack.c.bf16 %v208_v49, %v206_v48 }
   0xe   :  { %2747 = vmatprep.subr.bf16.mxu0 %v3574_v20  ;;  %v72_v56 = vld [vmem:[%s5477_s1 + $0xe8] sm:$0xff]  ;;  %2785 = vmatpush1.bf16.msra.mxu1 %v3652_v46  ;;  %v74_v58 = vld [vmem:[%s5477_s1 + $0xf8] sm:$0xff]  ;;  %v3691_v59 = vpack.c.bf16 %v213_v52, %v211_v50  ;;  %v210_v60 = vld [vmem:[%s5479_s3 + $0x40] sm:$0xff]  ;;  %v3706_v0 = vpack.c.bf16 %v69_v55, %v67_v54 }
   0xf   :  { %2787 = vmatprep.subr.bf16.mxu1 %v3654_v47  ;;  %v212_v61 = vld [vmem:[%s5479_s3 + $0x50] sm:$0xff]  ;;  %v215_v62 = vld [vmem:[%s5479_s3 + $0x68] sm:$0xff]  ;;  %v217_v63 = vld [vmem:[%s5479_s3 + $0x78] sm:$0xff]  ;;  %v3709_v1 = vpack.c.bf16 %v74_v58, %v72_v56 }
  0x10   :  { %v71_v2 = vld [vmem:[%s5477_s1 + $0xe0] sm:$0xff]  ;;  %v73_v4 = vld [vmem:[%s5477_s1 + $0xf0] sm:$0xff]  ;;  %v76_v5 = vld [vmem:[%s5477_s1 + $0x108] sm:$0xff]  ;;  %v3721_v6 = vpack.c.bf16 %v212_v61, %v210_v60  ;;  %v3727_v10 = vpack.c.bf16 %v217_v63, %v215_v62 }
  0x11   :  { %2749 = vmatpush1.bf16.msra.mxu0 %v3589_v25  ;;  %v78_v9 = vld [vmem:[%s5477_s1 + $0x118] sm:$0xff]  ;;  %v214_v11 = vld [vmem:[%s5479_s3 + $0x60] sm:$0xff]  ;;  %v216_v12 = vld [vmem:[%s5479_s3 + $0x70] sm:$0xff]  ;;  %v3742_v17 = vpack.c.bf16 %v73_v4, %v71_v2 }
  0x12   :  { %2751 = vmatprep.subr.bf16.mxu0 %v3592_v26  ;;  %2789 = vmatpush1.bf16.msra.mxu1 %v3685_v57  ;;  %v219_v15 = vld [vmem:[%s5479_s3 + $0x88] sm:$0xff]  ;;  %v221_v16 = vld [vmem:[%s5479_s3 + $0x98] sm:$0xff]  ;;  %v3745_v18 = vpack.c.bf16 %v78_v9, %v76_v5  ;;  %v75_v21 = vld [vmem:[%s5477_s1 + $0x100] sm:$0xff]  ;;  %v3757_v24 = vpack.c.bf16 %v216_v12, %v214_v11 }
  0x13   :  { %2791 = vmatprep.subr.bf16.mxu1 %v3691_v59  ;;  %v77_v22 = vld [vmem:[%s5477_s1 + $0x110] sm:$0xff]  ;;  %v80_v23 = vld [vmem:[%s5477_s1 + $0x128] sm:$0xff]  ;;  %v82_v27 = vld [vmem:[%s5477_s1 + $0x138] sm:$0xff]  ;;  %v3763_v28 = vpack.c.bf16 %v221_v16, %v219_v15 }
  0x14   :  { %v218_v29 = vld [vmem:[%s5479_s3 + $0x80] sm:$0xff]  ;;  %v220_v30 = vld [vmem:[%s5479_s3 + $0x90] sm:$0xff]  ;;  %v223_v31 = vld [vmem:[%s5479_s3 + $0xa8] sm:$0xff]  ;;  %v3778_v34 = vpack.c.bf16 %v77_v22, %v75_v21  ;;  %v3781_v35 = vpack.c.bf16 %v82_v27, %v80_v23 }
  0x15   :  { %2753 = vmatpush1.bf16.msra.mxu0 %v3613_v33  ;;  %v225_v32 = vld [vmem:[%s5479_s3 + $0xb8] sm:$0xff]  ;;  %v79_v38 = vld [vmem:[%s5477_s1 + $0x120] sm:$0xff]  ;;  %v81_v39 = vld [vmem:[%s5477_s1 + $0x130] sm:$0xff]  ;;  %v3793_v41 = vpack.c.bf16 %v220_v30, %v218_v29 }
  0x16   :  { %2755 = vmatprep.subr.bf16.mxu0 %v3627_v37  ;;  %2793 = vmatpush1.bf16.msra.mxu1 %v3721_v6  ;;  %v84_v40 = vld [vmem:[%s5477_s1 + $0x148] sm:$0xff]  ;;  %v86_v43 = vld [vmem:[%s5477_s1 + $0x158] sm:$0xff]  ;;  %v3799_v44 = vpack.c.bf16 %v225_v32, %v223_v31  ;;  %v222_v45 = vld [vmem:[%s5479_s3 + $0xa0] sm:$0xff]  ;;  %v3814_v52 = vpack.c.bf16 %v81_v39, %v79_v38 }
  0x17   :  { %2795 = vmatprep.subr.bf16.mxu1 %v3727_v10  ;;  %v224_v48 = vld [vmem:[%s5479_s3 + $0xb0] sm:$0xff]  ;;  %v227_v49 = vld [vmem:[%s5479_s3 + $0xc8] sm:$0xff]  ;;  %v229_v50 = vld [vmem:[%s5479_s3 + $0xd8] sm:$0xff]  ;;  %v3820_v55 = vpack.c.bf16 %v86_v43, %v84_v40 }
  0x18   :  { %5559 = vst [vmem:[#allocation8_spill] sm:$0xff] %v3814_v52  ;;  %v83_v54 = vld [vmem:[%s5477_s1 + $0x140] sm:$0xff]  ;;  %v85_v56 = vld [vmem:[%s5477_s1 + $0x150] sm:$0xff]  ;;  %v88_v58 = vld [vmem:[%s5477_s1 + $0x168] sm:$0xff]  ;;  %v3829_v60 = vpack.c.bf16 %v224_v48, %v222_v45 }
  0x19   :  { %2757 = vmatpush1.bf16.msra.mxu0 %v3666_v51  ;;  %5560 = vst [vmem:[#allocation9_spill] sm:$0xff] %v3820_v55 }
  0x1a   :  { %2759 = vmatprep.subr.bf16.mxu0 %v3673_v53  ;;  %2797 = vmatpush1.bf16.msra.mxu1 %v3757_v24 }
  0x1b   :  { %2799 = vmatprep.subr.bf16.mxu1 %v3763_v28 }
  0x1d   :  { %2761 = vmatpush1.bf16.msra.mxu0 %v3706_v0 }
  0x1e   :  { %2763 = vmatprep.subr.bf16.mxu0 %v3709_v1  ;;  %2801 = vmatpush1.bf16.msra.mxu1 %v3793_v41 }
  0x21   :  { %2765 = vmatpush1.bf16.msra.mxu0 %v3742_v17 }
  0x22   :  { %2767 = vmatprep.subr.bf16.mxu0 %v3745_v18 }
  0x25   :  { %2769 = vmatpush1.bf16.msra.mxu0 %v3778_v34 }
  0x26   :  { %2771 = vmatprep.subr.bf16.mxu0 %v3781_v35 }
  0x27   :  { %19 = vsyncpa [#allocation5], 0  ;;  %v90_v61 = vld [vmem:[%s5477_s1 + $0x178] sm:$0xff]  ;;  %2803 = vmatprep.subr.bf16.mxu1 %v3799_v44  ;;  %v3835_v62 = vpack.c.bf16 %v229_v50, %v227_v49  ;;  %v226_v63 = vld [vmem:[%s5479_s3 + $0xc0] sm:$0xff]  ;;  %v3850_v9 = vpack.c.bf16 %v85_v56, %v83_v54  ;;  %vm393_vm3 = vcmask 719872   ;;  %vm3445_vm6 = vmmov 0  }
  0x28   :  { %v228_v2 = vld [vmem:[%s5479_s3 + $0xd0] sm:$0xff]  ;;  %v231_v4 = vld [vmem:[%s5479_s3 + $0xe8] sm:$0xff]  ;;  %v233_v5 = vld [vmem:[%s5479_s3 + $0xf8] sm:$0xff]  ;;  %v3853_v11 = vpack.c.bf16 %v90_v61, %v88_v58  ;;  %2805 = vmatpush1.bf16.msra.mxu1 %v3829_v60  ;;  %vm483_vm7 = vcmask 261120   ;;  %vm651_vm10 = vcmask 82944   ;;  %s3447_s19 = smov [#allocation2]  }
  0x29   :  { %2773 = vmatpush1.bf16.msra.mxu0 %v3814_v52  ;;  %5561 = vst [vmem:[#allocation10_spill] sm:$0xff] %v3850_v9  ;;  %v87_v12 = vld [vmem:[%s5477_s1 + $0x160] sm:$0xff]  ;;  %v89_v15 = vld [vmem:[%s5477_s1 + $0x170] sm:$0xff]  ;;  %v3862_v16 = vpack.c.bf16 %v228_v2, %v226_v63  ;;  %2807 = vmatprep.subr.bf16.mxu1 %v3835_v62  ;;  %v3865_v21 = vpack.c.bf16 %v233_v5, %v231_v4  ;;  %v235_v27 = vld [vmem:[%s5479_s3 + $0x108] sm:$0xff]  ;;  %s2504_s20 = sshll.u32 %s3447_s19, 4  ;;  %s5443_s20 = int_to_ptr.vmem [resolvable:$true] %s2504_s20 }
  0x2a   :  { %2775 = vmatprep.subr.bf16.mxu0 %v3820_v55  ;;  %5562 = vst [vmem:[#allocation11_spill] sm:$0xff] %v3853_v11  ;;  %v230_v22 = vld [vmem:[%s5479_s3 + $0xe0] sm:$0xff]  ;;  %v232_v23 = vld [vmem:[%s5479_s3 + $0xf0] sm:$0xff]  ;;  %v237_v29 = vld [vmem:[%s5479_s3 + $0x118] sm:$0xff]  ;;  %v3880_v30 = vpack.c.bf16 %v89_v15, %v87_v12 }
  0x2b   :  { %v3884_v31 = vpack.c.bf16 %v232_v23, %v230_v22  ;;  %v3889_v32 = vld [vmem:[%s5477_s1 + $0x188] sm:$0xff]  ;;  %v3892_v38 = vpack.c.bf16 %v237_v29, %v235_v27  ;;  %v234_v39 = vld [vmem:[%s5479_s3 + $0x100] sm:$0xff]  ;;  %v236_v40 = vld [vmem:[%s5479_s3 + $0x110] sm:$0xff] }
  0x2c   :  { %5563 = vst [vmem:[#allocation12_spill] sm:$0xff] %v3880_v30  ;;  %2809 = vmatpush1.bf16.msra.mxu1 %v3862_v16  ;;  %5564 = vst [vmem:[#allocation13_spill] sm:$0xff] %v3889_v32  ;;  %v239_v43 = vld [vmem:[%s5479_s3 + $0x128] sm:$0xff]  ;;  %v241_v45 = vld [vmem:[%s5479_s3 + $0x138] sm:$0xff]  ;;  %v3914_v49 = vpack.c.bf16 %v236_v40, %v234_v39 }
  0x2d   :  { %2777 = vmatpush1.bf16.msra.mxu0 %v3850_v9  ;;  %2811 = vmatprep.subr.bf16.mxu1 %v3865_v21  ;;  %v3911_v48 = vld [vmem:[%s5477_s1 + $0x180] sm:$0xff]  ;;  %v3917_v50 = vpack.c.bf16 %v241_v45, %v239_v43  ;;  %v240_v56 = vld [vmem:[%s5479_s3 + $0x130] sm:$0xff]  ;;  %v243_v58 = vld [vmem:[%s5479_s3 + $0x148] sm:$0xff] }
  0x2e   :  { %2779 = vmatprep.subr.bf16.mxu0 %v3853_v11  ;;  %5565 = vst [vmem:[#allocation14_spill] sm:$0xff] %v3911_v48  ;;  %v238_v54 = vld [vmem:[%s5479_s3 + $0x120] sm:$0xff]  ;;  %v245_v61 = vld [vmem:[%s5479_s3 + $0x158] sm:$0xff]  ;;  %v244_v5 = vld [vmem:[%s5479_s3 + $0x150] sm:$0xff] }
  0x2f   :  { %v3934_v63 = vpack.c.bf16 %v240_v56, %v238_v54  ;;  %v3937_v2 = vpack.c.bf16 %v245_v61, %v243_v58  ;;  %v242_v4 = vld [vmem:[%s5479_s3 + $0x140] sm:$0xff]  ;;  %v249_v12 = vld [vmem:[%s5479_s3 + $0x178] sm:$0xff]  ;;  %v248_v27 = vld [vmem:[%s5479_s3 + $0x170] sm:$0xff] }
  0x30   :  { %2813 = vmatpush1.bf16.msra.mxu1 %v3884_v31  ;;  %v3952_v15 = vpack.c.bf16 %v244_v5, %v242_v4  ;;  %v246_v23 = vld [vmem:[%s5479_s3 + $0x160] sm:$0xff]  ;;  %v251_v29 = vld [vmem:[%s5479_s3 + $0x188] sm:$0xff]  ;;  %v253_v39 = vld [vmem:[%s5479_s3 + $0x198] sm:$0xff] }
  0x31   :  { %2781 = vmatpush1.bf16.msra.mxu0 %v3880_v30  ;;  %2815 = vmatprep.subr.bf16.mxu1 %v3892_v38  ;;  %v3970_v40 = vpack.c.bf16 %v248_v27, %v246_v23  ;;  %v3973_v43 = vpack.c.bf16 %v253_v39, %v251_v29  ;;  %v250_v45 = vld [vmem:[%s5479_s3 + $0x180] sm:$0xff]  ;;  %v252_v54 = vld [vmem:[%s5479_s3 + $0x190] sm:$0xff]  ;;  %v255_v56 = vld [vmem:[%s5479_s3 + $0x1a8] sm:$0xff] }
  0x32   :  { %166 = vmatprep.subr.mxu0 %v3889_v32  ;;  %v257_v58 = vld [vmem:[%s5479_s3 + $0x1b8] sm:$0xff]  ;;  %v3988_v61 = vpack.c.bf16 %v252_v54, %v250_v45  ;;  %v254_v5 = vld [vmem:[%s5479_s3 + $0x1a0] sm:$0xff]  ;;  %v260_v45 = vld [vmem:[%s5479_s3 + $0x1d0] sm:$0xff] }
  0x33   :  { %v3991_v4 = vpack.c.bf16 %v257_v58, %v255_v56  ;;  %v261_v23 = vld [vmem:[%s5479_s3 + $0x1d8] sm:$0xff]  ;;  %v258_v39 = vld [vmem:[%s5479_s3 + $0x1c0] sm:$0xff]  ;;  %v263_v56 = vld [vmem:[%s5479_s3 + $0x1e8] sm:$0xff] }
  0x34   :  { %2817 = vmatpush1.bf16.msra.mxu1 %v3914_v49  ;;  %v4018_v54 = vpack.c.bf16 %v260_v45, %v258_v39  ;;  %v265_v58 = vld [vmem:[%s5479_s3 + $0x1f8] sm:$0xff]  ;;  %v359_v39 = vld [vmem:[%s5481_s5] sm:$0xff]  ;;  %v360_v45 = vld [vmem:[%s5481_s5 + $0x8] sm:$0xff] }
  0x35   :  { %167 = vmatpush1.msra.mxu0 %v3911_v48  ;;  %2819 = vmatprep.subr.bf16.mxu1 %v3917_v50  ;;  %v363_v32 = vld [vmem:[%s5481_s5 + $0x20] sm:$0xff] }
  0x36   :  { %183 = vmatmul.mubr.f32.vlgmr.msra.gmra.mrb[0].mxu0 %v3624_v36  ;;  %v247_v36 = vld [vmem:[%s5479_s3 + $0x168] sm:$0xff]  ;;  %v93_v30 = vld [vmem:[%s5478_s2] sm:$0x3] }
  0x37   :  { %v3955_v22 = vpack.c.bf16 %v249_v12, %v247_v36  ;;  %v256_v36 = vld [vmem:[%s5479_s3 + $0x1b0] sm:$0xff]  ;;  %v259_v12 = vld [vmem:[%s5479_s3 + $0x1c8] sm:$0xff] }
  0x38   :  { %2821 = vmatpush1.bf16.msra.mxu1 %v3934_v63  ;;  %v4006_v27 = vpack.c.bf16 %v256_v36, %v254_v5  ;;  %v4009_v29 = vpack.c.bf16 %v261_v23, %v259_v12  ;;  %v4028_v5 = vpack.c.bf16 %v265_v58, %v263_v56  ;;  %v262_v36 = vld [vmem:[%s5479_s3 + $0x1e0] sm:$0xff]  ;;  %v264_v12 = vld [vmem:[%s5479_s3 + $0x1f0] sm:$0xff]  ;;  %v5518_v58 = vmov 0.0|0.0  }
  0x39   :  { %2823 = vmatprep.subr.bf16.mxu1 %v3937_v2  ;;  %v4036_v23 = vpack.c.bf16 %v264_v12, %v262_v36  ;;  %v361_v56 = vld [vmem:[%s5481_s5 + $0x10] sm:$0xff]  ;;  %2846 = vmatprep.subr.bf16.mxu0 %v5518_v58  ;;  %v4050_v36 = vpack.c.bf16 %v360_v45, %v359_v39  ;;  %v362_v12 = vld [vmem:[%s5481_s5 + $0x18] sm:$0xff]  ;;  %v364_v39 = vld [vmem:[%s5481_s5 + $0x28] sm:$0xff] }
  0x3a   :  { %v4057_v48 = vpack.c.bf16 %v362_v12, %v361_v56  ;;  %v4067_v45 = vpack.c.bf16 %v364_v39, %v363_v32  ;;  %v365_v56 = vld [vmem:[%s5481_s5 + $0x30] sm:$0xff]  ;;  %v366_v12 = vld [vmem:[%s5481_s5 + $0x38] sm:$0xff]  ;;  %v367_v32 = vld [vmem:[%s5481_s5 + $0x40] sm:$0xff] }
  0x3b   :  { %5566 = vst [vmem:[#allocation15_spill] sm:$0xff] %v4050_v36  ;;  %2848 = vmatpush1.bf16.msra.mxu0 %v4050_v36  ;;  %v4077_v36 = vpack.c.bf16 %v366_v12, %v365_v56  ;;  %v368_v39 = vld [vmem:[%s5481_s5 + $0x48] sm:$0xff]  ;;  %v369_v56 = vld [vmem:[%s5481_s5 + $0x50] sm:$0xff]  ;;  %v370_v12 = vld [vmem:[%s5481_s5 + $0x58] sm:$0xff] }
  0x3c   :  { %2825 = vmatpush1.bf16.msra.mxu1 %v3952_v15  ;;  %5567 = vst [vmem:[#allocation16_spill] sm:$0xff] %v4057_v48  ;;  %2849 = vmatprep.subr.bf16.mxu0 %v5518_v58  ;;  %5568 = vst [vmem:[#allocation17_spill] sm:$0xff] %v4067_v45 }
  0x3d   :  { %2827 = vmatprep.subr.bf16.mxu1 %v3955_v22  ;;  %5569 = vst [vmem:[#allocation18_spill] sm:$0xff] %v4077_v36 }
  0x3f   :  { %2851 = vmatpush1.bf16.msra.mxu0 %v4057_v48  ;;  %v4087_v48 = vpack.c.bf16 %v368_v39, %v367_v32  ;;  %v371_v32 = vld [vmem:[%s5481_s5 + $0x60] sm:$0xff]  ;;  %v372_v39 = vld [vmem:[%s5481_s5 + $0x68] sm:$0xff] }
  0x40   :  { %2829 = vmatpush1.bf16.msra.mxu1 %v3970_v40  ;;  %2852 = vmatprep.subr.bf16.mxu0 %v5518_v58 }
  0x41   :  { %2831 = vmatprep.subr.bf16.mxu1 %v3973_v43  ;;  %5570 = vst [vmem:[#allocation19_spill] sm:$0xff] %v4087_v48 }
  0x43   :  { %2854 = vmatpush1.bf16.msra.mxu0 %v4067_v45  ;;  %v4097_v45 = vpack.c.bf16 %v370_v12, %v369_v56  ;;  %v373_v56 = vld [vmem:[%s5481_s5 + $0x70] sm:$0xff]  ;;  %v374_v12 = vld [vmem:[%s5481_s5 + $0x78] sm:$0xff] }
  0x44   :  { %2833 = vmatpush1.bf16.msra.mxu1 %v3988_v61  ;;  %2855 = vmatprep.subr.bf16.mxu0 %v5518_v58 }
  0x45   :  { %2835 = vmatprep.subr.bf16.mxu1 %v3991_v4  ;;  %5571 = vst [vmem:[#allocation20_spill] sm:$0xff] %v4097_v45 }
  0x47   :  { %2857 = vmatpush1.bf16.msra.mxu0 %v4077_v36  ;;  %v4107_v36 = vpack.c.bf16 %v372_v39, %v371_v32  ;;  %v375_v32 = vld [vmem:[%s5481_s5 + $0x80] sm:$0xff]  ;;  %v376_v39 = vld [vmem:[%s5481_s5 + $0x88] sm:$0xff] }
  0x48   :  { %2837 = vmatpush1.bf16.msra.mxu1 %v4006_v27  ;;  %2858 = vmatprep.subr.bf16.mxu0 %v5518_v58 }
  0x49   :  { %2839 = vmatprep.subr.bf16.mxu1 %v4009_v29  ;;  %5572 = vst [vmem:[#allocation21_spill] sm:$0xff] %v4107_v36 }
  0x4b   :  { %2860 = vmatpush1.bf16.msra.mxu0 %v4087_v48  ;;  %v4117_v48 = vpack.c.bf16 %v374_v12, %v373_v56  ;;  %v377_v56 = vld [vmem:[%s5481_s5 + $0x90] sm:$0xff]  ;;  %v378_v12 = vld [vmem:[%s5481_s5 + $0x98] sm:$0xff] }
  0x4c   :  { %2841 = vmatpush1.bf16.msra.mxu1 %v4018_v54  ;;  %2861 = vmatprep.subr.bf16.mxu0 %v5518_v58 }
  0x4d   :  { %2843 = vmatprep.subr.bf16.mxu1 %v4028_v5  ;;  %5573 = vst [vmem:[#allocation22_spill] sm:$0xff] %v4117_v48 }
  0x4f   :  { %2863 = vmatpush1.bf16.msra.mxu0 %v4097_v45  ;;  %v4127_v45 = vpack.c.bf16 %v376_v39, %v375_v32  ;;  %v379_v32 = vld [vmem:[%s5481_s5 + $0xa0] sm:$0xff]  ;;  %v380_v39 = vld [vmem:[%s5481_s5 + $0xa8] sm:$0xff] }
  0x50   :  { %2845 = vmatpush1.bf16.msra.mxu1 %v4036_v23  ;;  %2864 = vmatprep.subr.bf16.mxu0 %v5518_v58 }
  0x51   :  { %2885 = vmatprep.subr.bf16.mxu1 %v5518_v58  ;;  %5574 = vst [vmem:[#allocation23_spill] sm:$0xff] %v4127_v45 }
  0x53   :  { %2866 = vmatpush1.bf16.msra.mxu0 %v4107_v36  ;;  %v4137_v36 = vpack.c.bf16 %v378_v12, %v377_v56  ;;  %v381_v56 = vld [vmem:[%s5481_s5 + $0xb0] sm:$0xff]  ;;  %v382_v12 = vld [vmem:[%s5481_s5 + $0xb8] sm:$0xff] }
  0x54   :  { %2867 = vmatprep.subr.bf16.mxu0 %v5518_v58 }
  0x55   :  { %5575 = vst [vmem:[#allocation24_spill] sm:$0xff] %v4137_v36 }
  0x57   :  { %2869 = vmatpush1.bf16.msra.mxu0 %v4117_v48  ;;  %v4147_v48 = vpack.c.bf16 %v380_v39, %v379_v32  ;;  %v95_v32 = vlaneseq }
  0x58   :  { %2870 = vmatprep.subr.bf16.mxu0 %v5518_v58 }
  0x59   :  { %5576 = vst [vmem:[#allocation25_spill] sm:$0xff] %v4147_v48  ;;  %v96_v39 = vshrl.u32 %v95_v32, 7  ;;  %v5507_v32 = vmov 1.0  }
  0x5b   :  { %2872 = vmatpush1.bf16.msra.mxu0 %v4127_v45  ;;  %v4157_v45 = vpack.c.bf16 %v382_v12, %v381_v56  ;;  %v4167_v11 = vsub.s32 1, %v96_v39 }
  0x5c   :  { %2873 = vmatprep.subr.bf16.mxu0 %v5518_v58 }
  0x5d   :  { %5577 = vst [vmem:[#allocation26_spill] sm:$0xff] %v4157_v45  ;;  %v102_v56 = vrot.slane %v93_v30, %v4167_v11 }
  0x5f   :  { %2875 = vmatpush1.bf16.msra.mxu0 %v4137_v36  ;;  %v4162_v36 = vsub.s32 0, %v96_v39  ;;  %v5509_v39 = vmov 0.0  }
  0x60   :  { %2876 = vmatprep.subr.bf16.mxu0 %v5518_v58 }
  0x63   :  { %2878 = vmatpush1.bf16.msra.mxu0 %v4147_v48  ;;  %v98_v48 = vrot.slane %v93_v30, %v4162_v36  ;;  %v383_v30 = vld [vmem:[%s5481_s5 + $0xc0] sm:$0xff] }
  0x64   :  { %2879 = vmatprep.subr.bf16.mxu0 %v5518_v58 }
  0x67   :  { %2881 = vmatpush1.bf16.msra.mxu0 %v4157_v45 }
  0x68   :  { %2882 = vmatprep.subr.bf16.mxu0 %v5518_v58 }
 0x109   :  { %v184_v12 = vpop.f32.mrb[0].mxu0 }
 0x10a   :  { %v4171_v9 = vadd.f32 %v184_v12, %v98_v48  ;;  %v186_v45 = vpop.f32.mrb[1].mxu0  ;;  %v384_v48 = vld [vmem:[%s5481_s5 + $0xc8] sm:$0xff]  ;;  %v472_v12 = vld [vmem:[%s5483_s7] sm:$0xff] }
 0x10b   :  { %v4173_v55 = vadd.f32 %v186_v45, %v102_v56  ;;  %v4189_v45 = vpack.c.bf16 %v384_v48, %v383_v30  ;;  %v4196_v56 = vld [vmem:[%s5481_s5 + $0xd0] sm:$0xff]  ;;  %v473_v30 = vld [vmem:[%s5483_s7 + $0x8] sm:$0xff] }
 0x10c   :  { %5578 = vst [vmem:[#allocation27_spill] sm:$0xff] %v4171_v9  ;;  %vm196_vm2 = vcmp.gt.f32.partialorder %v4171_v9, 1.0  ;;  %5581 = vst [vmem:[#allocation30_spill] sm:$0xff] %v4196_v56  ;;  %v4206_v48 = vpack.c.bf16 %v473_v30, %v472_v12  ;;  %v5583_v30 = vmov 1.0  }
 0x10d   :  { %5579 = vst [vmem:[#allocation28_spill] sm:$0xff] %v4173_v55  ;;  %vm197_vm1 = vcmp.gt.f32.partialorder %v4173_v55, 1.0  ;;  %5580 = vst [vmem:[#allocation29_spill] sm:$0xff] %v4189_v45  ;;  %2884 = vmatpush1.bf16.msra.mxu0 %v4189_v45 }
 0x10e   :  { %2535 = vmatprep.mubr.msk.f32.mxu1 %vm197_vm1, %v5507_v32  ;;  %449 = vmatprep.subr.mxu0 %v5509_v39 }
 0x10f   :  { %2536 = vmatmul.mubr.msk.f32.vlgmr.msra.gmra.mrb[0].mxu1 %vm196_vm2, %v5507_v32  ;;  %v266_v32 = vld [vmem:[%s5480_s4] sm:$0x3] }
 0x110   :  { %2887 = vmatpush3.bf16.msra.mxu1 %v4206_v48  ;;  %v271_v39 = vrot.slane %v266_v32, %v4162_v36  ;;  %v275_v55 = vrot.slane %v266_v32, %v4167_v11 }
 0x111   :  { %450 = vmatpush1.msra.mxu0 %v4196_v56  ;;  %2888 = vmatprep.subr.bf16.mxu1 %v5518_v58 }
 0x112   :  { %2946 = vmatprep.subr.bf16.mxu0 %v3640_v42  ;;  %v5582_v42 = vmov 0.0  }
 0x113   :  { %2654 = vmatprep.mubr.msk.f32.mxu1 %vm3445_vm6, %v5582_v42 }
 0x1e2   :  { %v344_v9 = vpop.f32.mrb[0].mxu1 }
 0x1e3   :  { %v346_v56 = vpop.f32.mrb[1].mxu1  ;;  %v4215_v45 = vadd.f32 %v344_v9, %v271_v39 }
 0x1e4   :  { %v4217_v52 = vadd.f32 %v346_v56, %v275_v55 }
 0x1e5   :  { %vm353_vm5 = vcmp.gt.f32.partialorder %v4215_v45, 1.0 }
 0x1e6   :  { %vm354_vm4 = vcmp.gt.f32.partialorder %v4217_v52, 1.0 }
 0x1e7   :  { %v4221_v12 = vsel %vm354_vm4, 1.0, %v5582_v42 }
 0x1e8   :  { %2540 = vmatprep.mubr.msk.f32.mxu0 %vm393_vm3, %v4221_v12 }
 0x1e9   :  { %2541 = vmatmul.mubr.msk.f32.vlgmr.msra.gmra.mrb[2].mxu0 %vm353_vm5, %v5583_v30 }
 0x1ea   :  { %2948 = vmatpush1.bf16.msra.mxu0 %v3652_v46  ;;  %v474_v46 = vld [vmem:[%s5483_s7 + $0x10] sm:$0xff] }
 0x1eb   :  { %2950 = vmatprep.subr.bf16.mxu0 %v3654_v47  ;;  %v475_v47 = vld [vmem:[%s5483_s7 + $0x18] sm:$0xff] }
 0x1ee   :  { %2952 = vmatpush1.bf16.msra.mxu0 %v3685_v57  ;;  %v4267_v57 = vpack.c.bf16 %v475_v47, %v474_v46  ;;  %v5606_v46 = vld [vmem:[#allocation28_spill] sm:$0xff] }
 0x1ef   :  { %2954 = vmatprep.subr.bf16.mxu0 %v3691_v59  ;;  %v4276_v59 = vld [vmem:[%s5482_s6] ss:$0 sm:$0xff]  ;;  %v802_v47 = vmul.f32 0.9048374, %v5606_v46 }
 0x1f0   :  { %2890 = vmatpush3.bf16.msra.mxu1 %v4267_v57 }
 0x1f1   :  { %2891 = vmatprep.subr.bf16.mxu1 %v5518_v58 }
 0x1f2   :  { %2956 = vmatpush1.bf16.msra.mxu0 %v3721_v6  ;;  %v562_v6 = vld [vmem:[%s5485_s9] sm:$0xff] }
 0x1f3   :  { %2958 = vmatprep.subr.bf16.mxu0 %v3727_v10  ;;  %v563_v10 = vld [vmem:[%s5485_s9 + $0x8] sm:$0xff] }
 0x1f6   :  { %2960 = vmatpush1.bf16.msra.mxu0 %v3757_v24 }
 0x1f7   :  { %2962 = vmatprep.subr.bf16.mxu0 %v3763_v28 }
 0x1fa   :  { %2964 = vmatpush1.bf16.msra.mxu0 %v3793_v41 }
 0x1fb   :  { %2966 = vmatprep.subr.bf16.mxu0 %v3799_v44  ;;  %v4287_v44 = vpack.c.bf16 %v563_v10, %v562_v6 }
 0x1fe   :  { %2968 = vmatpush1.bf16.msra.mxu0 %v3829_v60  ;;  %v564_v60 = vld [vmem:[%s5485_s9 + $0x10] sm:$0xff] }
 0x1ff   :  { %2970 = vmatprep.subr.bf16.mxu0 %v3835_v62  ;;  %v565_v62 = vld [vmem:[%s5485_s9 + $0x18] sm:$0xff] }
 0x200   :  { %v4305_v9 = vpack.c.bf16 %v565_v62, %v564_v60  ;;  %v2534_v60 = vsel %vm197_vm1, 1.0, %v5582_v42 }
 0x202   :  { %2972 = vmatpush1.bf16.msra.mxu0 %v3862_v16  ;;  %v4312_v16 = vld [vmem:[%s5484_s8] ss:$0 sm:$0xff] }
 0x203   :  { %2974 = vmatprep.subr.bf16.mxu0 %v3865_v21  ;;  %v2550_v21 = vld.sshfl [vmem:[%s5476_s0 + $0x4] sm:$0x33 pattern:$0x76325410] }
 0x206   :  { %2976 = vmatpush1.bf16.msra.mxu0 %v3884_v31 }
 0x207   :  { %2978 = vmatprep.subr.bf16.mxu0 %v3892_v38 }
 0x20a   :  { %2980 = vmatpush1.bf16.msra.mxu0 %v3914_v49 }
 0x20b   :  { %2982 = vmatprep.subr.bf16.mxu0 %v3917_v50  ;;  %v726_v50 = vcombine.high %v2550_v21, %v2550_v21 }
 0x20e   :  { %2984 = vmatpush1.bf16.msra.mxu0 %v3934_v63 }
 0x20f   :  { %2986 = vmatprep.subr.bf16.mxu0 %v3937_v2  ;;  %v5603_v2 = vld [vmem:[#allocation29_spill] sm:$0xff] }
 0x212   :  { %2988 = vmatpush1.bf16.msra.mxu0 %v3952_v15  ;;  %v5604_v15 = vld [vmem:[#allocation30_spill] sm:$0xff] }
 0x213   :  { %2990 = vmatprep.subr.bf16.mxu0 %v3955_v22  ;;  %v4383_v22 = vld [vmem:[%s5486_s10] ss:$0 sm:$0xff] }
 0x216   :  { %2992 = vmatpush1.bf16.msra.mxu0 %v3970_v40 }
 0x217   :  { %2994 = vmatprep.subr.bf16.mxu0 %v3973_v43 }
 0x21a   :  { %2996 = vmatpush1.bf16.msra.mxu0 %v3988_v61 }
 0x21b   :  { %2998 = vmatprep.subr.bf16.mxu0 %v3991_v4 }
 0x21e   :  { %3000 = vmatpush1.bf16.msra.mxu0 %v4006_v27  ;;  %v706_v27 = vld [vmem:[%s5478_s2] sm:$0x3] }
 0x21f   :  { %3002 = vmatprep.subr.bf16.mxu0 %v4009_v29  ;;  %v711_v29 = vrot.slane %v706_v27, %v4162_v36 }
 0x222   :  { %3004 = vmatpush1.bf16.msra.mxu0 %v4018_v54  ;;  %v715_v54 = vrot.slane %v706_v27, %v4167_v11 }
 0x223   :  { %3006 = vmatprep.subr.bf16.mxu0 %v4028_v5 }
 0x226   :  { %3008 = vmatpush1.bf16.msra.mxu0 %v4036_v23  ;;  %v5605_v23 = vld [vmem:[#allocation27_spill] sm:$0xff] }
 0x227   :  { %3048 = vmatprep.subr.bf16.mxu0 %v5518_v58  ;;  %v801_v32 = vmul.f32 0.9048374, %v5605_v23  ;;  %v1273_v23 = vld [vmem:[%s5477_s1 + $0x10] sm:$0xff] }
 0x2bc   :  { %v463_v24 = vpop.f32.mrb[2].mxu0 }
 0x2bd   :  { %v4285_v28 = vadd.f32 %v4276_v59, %v463_v24  ;;  %v465_v41 = vpop.f32.mrb[3].mxu0  ;;  %v2533_v24 = vsel %vm196_vm2, 1.0, %v5582_v42 }
 0x2bf   :  { %vm469_vm8 = vcmp.gt.f32.partialorder %v4285_v28, 1.0 }
 0x2c0   :  { %v4291_v55 = vsel %vm469_vm8, 1.0, %v5582_v42 }
 0x2c1   :  { %2655 = vmatmul.mubr.msk.f32.vlgmr.msra.gmra.mrb[2].mxu1 %vm483_vm7, %v4291_v55 }
 0x2c2   :  { %2893 = vmatpush3.bf16.msra.mxu1 %v4287_v44  ;;  %2665 = vmatprep.mubr.msk.f32.mxu1 %vm3445_vm6, %v5582_v42 }
 0x2c3   :  { %2894 = vmatprep.subr.bf16.mxu1 %v5518_v58 }
 0x2c6   :  { %2896 = vmatpush3.bf16.msra.mxu1 %v4305_v9 }
 0x2c7   :  { %2898 = vmatprep.subr.bf16.mxu1 %v3524_v3  ;;  %v5584_v3 = vld [vmem:[#allocation8_spill] sm:$0xff] }
 0x394   :  { %v553_v31 = vpop.f32.mrb[2].mxu1 }
 0x395   :  { %v4318_v38 = vadd.f32 %v4312_v16, %v553_v31  ;;  %v2656_v49 = vpop.f32.mrb[3].mxu1  ;;  %v877_v31 = vld [vmem:[%s5480_s4] sm:$0x3] }
 0x396   :  { %v882_v49 = vrot.slane %v877_v31, %v4162_v36 }
 0x397   :  { %vm559_vm9 = vcmp.gt.f32.partialorder %v4318_v38, 1.0 }
 0x398   :  { %v4322_v63 = vsel %vm559_vm9, 1.0, %v5582_v42 }
 0x399   :  { %2666 = vmatmul.mubr.msk.f32.vlgmr.msra.gmra.mrb[4].mxu1 %vm483_vm7, %v4322_v63 }
 0x39a   :  { %2900 = vmatpush1.bf16.msra.mxu1 %v3535_v7  ;;  %2551 = vmatprep.mubr.msk.f32.mxu1 %vm115_vm0, %v726_v50  ;;  %v5585_v7 = vld [vmem:[#allocation9_spill] sm:$0xff]  ;;  %v886_v50 = vrot.slane %v877_v31, %v4167_v11 }
 0x39b   :  { %2902 = vmatprep.subr.bf16.mxu1 %v3537_v8  ;;  %v5586_v8 = vld [vmem:[#allocation10_spill] sm:$0xff] }
 0x39e   :  { %2904 = vmatpush1.bf16.msra.mxu1 %v3553_v13  ;;  %v5587_v13 = vld [vmem:[#allocation11_spill] sm:$0xff] }
 0x39f   :  { %2906 = vmatprep.subr.bf16.mxu1 %v3556_v14  ;;  %v5588_v14 = vld [vmem:[#allocation12_spill] sm:$0xff] }
 0x3a2   :  { %2908 = vmatpush1.bf16.msra.mxu1 %v3571_v19  ;;  %v5589_v19 = vld [vmem:[#allocation13_spill] sm:$0xff] }
 0x3a3   :  { %2910 = vmatprep.subr.bf16.mxu1 %v3574_v20  ;;  %v5590_v20 = vld [vmem:[#allocation14_spill] sm:$0xff] }
 0x3a6   :  { %2912 = vmatpush1.bf16.msra.mxu1 %v3589_v25  ;;  %v5591_v25 = vld [vmem:[#allocation15_spill] sm:$0xff] }
 0x3a7   :  { %2914 = vmatprep.subr.bf16.mxu1 %v3592_v26  ;;  %v5592_v26 = vld [vmem:[#allocation16_spill] sm:$0xff] }
 0x3aa   :  { %2916 = vmatpush1.bf16.msra.mxu1 %v3613_v33  ;;  %v5593_v33 = vld [vmem:[#allocation17_spill] sm:$0xff] }
 0x3ab   :  { %2918 = vmatprep.subr.bf16.mxu1 %v3627_v37  ;;  %v5594_v37 = vld [vmem:[#allocation18_spill] sm:$0xff] }
 0x3ae   :  { %2920 = vmatpush1.bf16.msra.mxu1 %v3666_v51  ;;  %v5595_v51 = vld [vmem:[#allocation19_spill] sm:$0xff] }
 0x3af   :  { %2922 = vmatprep.subr.bf16.mxu1 %v3673_v53  ;;  %v5596_v53 = vld [vmem:[#allocation20_spill] sm:$0xff] }
 0x3b2   :  { %2924 = vmatpush1.bf16.msra.mxu1 %v3706_v0  ;;  %v5597_v0 = vld [vmem:[#allocation21_spill] sm:$0xff] }
 0x3b3   :  { %2926 = vmatprep.subr.bf16.mxu1 %v3709_v1  ;;  %v5598_v1 = vld [vmem:[#allocation22_spill] sm:$0xff] }
 0x3b6   :  { %2928 = vmatpush1.bf16.msra.mxu1 %v3742_v17  ;;  %v5599_v17 = vld [vmem:[#allocation23_spill] sm:$0xff] }
 0x3b7   :  { %2930 = vmatprep.subr.bf16.mxu1 %v3745_v18  ;;  %v5600_v18 = vld [vmem:[#allocation24_spill] sm:$0xff] }
 0x3ba   :  { %2932 = vmatpush1.bf16.msra.mxu1 %v3778_v34  ;;  %v5601_v34 = vld [vmem:[#allocation25_spill] sm:$0xff] }
 0x3bb   :  { %2934 = vmatprep.subr.bf16.mxu1 %v3781_v35  ;;  %v5602_v35 = vld [vmem:[#allocation26_spill] sm:$0xff] }
 0x3be   :  { %2936 = vmatpush1.bf16.msra.mxu1 %v5584_v3 }
 0x3bf   :  { %2938 = vmatprep.subr.bf16.mxu1 %v5585_v7 }
 0x3c2   :  { %2940 = vmatpush1.bf16.msra.mxu1 %v5586_v8 }
 0x3c3   :  { %2942 = vmatprep.subr.bf16.mxu1 %v5587_v13  ;;  %v961_v13 = vmul.f32 0.9048374, %v4217_v52 }
 0x3c6   :  { %2944 = vmatpush1.bf16.msra.mxu1 %v5588_v14 }
 0x3c7   :  { %778 = vmatprep.subr.mxu1 %v5589_v19 }
 0x3ca   :  { %779 = vmatpush1.msra.mxu1 %v5590_v20 }
 0x3cb   :  { %795 = vmatmul.mubr.f32.vlgmr.msra.gmra.mrb[6].mxu1 %v2550_v21  ;;  %3009 = vmatprep.subr.bf16.mxu1 %v5518_v58 }
 0x3cc   :  { %3011 = vmatpush1.bf16.msra.mxu1 %v5591_v25 }
 0x3cd   :  { %3012 = vmatprep.subr.bf16.mxu1 %v5518_v58 }
 0x3d0   :  { %3014 = vmatpush1.bf16.msra.mxu1 %v5592_v26 }
 0x3d1   :  { %3015 = vmatprep.subr.bf16.mxu1 %v5518_v58 }
 0x3d4   :  { %3017 = vmatpush1.bf16.msra.mxu1 %v5593_v33 }
 0x3d5   :  { %3018 = vmatprep.subr.bf16.mxu1 %v5518_v58 }
 0x3d8   :  { %3020 = vmatpush1.bf16.msra.mxu1 %v5594_v37 }
 0x3d9   :  { %3021 = vmatprep.subr.bf16.mxu1 %v5518_v58 }
 0x3dc   :  { %3023 = vmatpush1.bf16.msra.mxu1 %v5595_v51 }
 0x3dd   :  { %3024 = vmatprep.subr.bf16.mxu1 %v5518_v58 }
 0x3e0   :  { %3026 = vmatpush1.bf16.msra.mxu1 %v5596_v53 }
 0x3e1   :  { %3027 = vmatprep.subr.bf16.mxu1 %v5518_v58 }
 0x3e4   :  { %3029 = vmatpush1.bf16.msra.mxu1 %v5597_v0 }
 0x3e5   :  { %3030 = vmatprep.subr.bf16.mxu1 %v5518_v58 }
 0x3e8   :  { %3032 = vmatpush1.bf16.msra.mxu1 %v5598_v1  ;;  %v1428_v1 = vld [vmem:[%s5479_s3] sm:$0xff] }
 0x3e9   :  { %3033 = vmatprep.subr.bf16.mxu1 %v5518_v58 }
 0x3ec   :  { %3035 = vmatpush1.bf16.msra.mxu1 %v5599_v17 }
 0x3ed   :  { %3036 = vmatprep.subr.bf16.mxu1 %v5518_v58 }
 0x3f0   :  { %3038 = vmatpush1.bf16.msra.mxu1 %v5600_v18  ;;  %v1430_v18 = vld [vmem:[%s5479_s3 + $0x10] sm:$0xff] }
 0x3f1   :  { %3039 = vmatprep.subr.bf16.mxu1 %v5518_v58 }
 0x3f4   :  { %3041 = vmatpush1.bf16.msra.mxu1 %v5601_v34  ;;  %v1433_v34 = vld [vmem:[%s5479_s3 + $0x28] sm:$0xff] }
 0x3f5   :  { %3042 = vmatprep.subr.bf16.mxu1 %v5518_v58 }
 0x3f8   :  { %3044 = vmatpush1.bf16.msra.mxu1 %v5602_v35  ;;  %v1435_v35 = vld [vmem:[%s5479_s3 + $0x38] sm:$0xff] }
 0x3f9   :  { %3045 = vmatprep.subr.bf16.mxu1 %v5518_v58 }
 0x3fc   :  { %3047 = vmatpush1.bf16.msra.mxu1 %v5603_v2  ;;  %v4497_v2 = vpack.c.bf16 %v1430_v18, %v1428_v1  ;;  %v1296_v1 = vld [vmem:[%s5477_s1 + $0xc8] sm:$0xff]  ;;  %v1298_v18 = vld [vmem:[%s5477_s1 + $0xd8] sm:$0xff] }
 0x3fd   :  { %1061 = vmatprep.subr.mxu1 %v5582_v42 }
 0x400   :  { %1062 = vmatpush1.msra.mxu1 %v5604_v15  ;;  %v4499_v15 = vpack.c.bf16 %v1435_v35, %v1433_v34  ;;  %v4627_v35 = vpack.c.bf16 %v1298_v18, %v1296_v1 }
 0x402   :  { %5615 = vst [vmem:[#allocation16_spill] sm:$0xff] %v4627_v35 }
 0x46c   :  { %v642_v40 = vpop.f32.mrb[4].mxu1 }
 0x46d   :  { %v4386_v43 = vadd.f32 %v4383_v22, %v642_v40  ;;  %v2667_v61 = vpop.f32.mrb[5].mxu1 }
 0x46e   :  { %v1169_v61 = vmul.f32 0.9048374, %v4318_v38  ;;  %v1276_v38 = vld [vmem:[%s5477_s1 + $0x28] sm:$0xff] }
 0x46f   :  { %vm648_vm11 = vcmp.gt.f32.partialorder %v4386_v43, 1.0  ;;  %653 = vst.msk [vmem:[#allocation4] sm:$0x3] %vm651_vm10, %v4386_v43 }
 0x470   :  { %v4392_v4 = vsel %vm648_vm11, 1.0, %v5582_v42 }
 0x471   :  { %652 = vst.msk [vmem:[#allocation2] sm:$0x3] %vm651_vm10, %v4392_v4 }
 0x49e   :  { %v796_v5 = vpop.f32.mrb[6].mxu1 }
 0x49f   :  { %v797_v39 = vadd.f32 %v796_v5, %v711_v29  ;;  %v798_v56 = vpop.f32.mrb[7].mxu1  ;;  %v1271_v5 = vld [vmem:[%s5477_s1] sm:$0xff] }
 0x4a0   :  { %v799_v6 = vadd.f32 %v798_v56, %v715_v54  ;;  %v4526_v56 = vpack.c.bf16 %v1273_v23, %v1271_v5  ;;  %v1299_v23 = vld [vmem:[%s5477_s1 + $0xe0] sm:$0xff] }
 0x4a1   :  { %v803_v10 = vadd.f32 %v801_v32, %v797_v39  ;;  %v4515_v32 = vld.sshfl [vmem:[%s5476_s0 + $0x8] sm:$0x33 pattern:$0x76325410] }
 0x4a2   :  { %v804_v41 = vadd.f32 %v802_v47, %v799_v6  ;;  %v1341_v46 = vcombine.high %v4515_v32, %v4515_v32  ;;  %v1275_v6 = vld [vmem:[%s5477_s1 + $0x20] sm:$0xff] }
 0x4a3   :  { %v4409_v62 = vsub.f32 %v803_v10, %v2533_v24  ;;  %v1277_v10 = vld [vmem:[%s5477_s1 + $0x30] sm:$0xff]  ;;  %v1280_v24 = vld [vmem:[%s5477_s1 + $0x48] sm:$0xff] }
 0x4a4   :  { %v4411_v21 = vsub.f32 %v804_v41, %v2534_v60  ;;  %v1282_v41 = vld [vmem:[%s5477_s1 + $0x58] sm:$0xff]  ;;  %v4551_v60 = vpack.c.bf16 %v1277_v10, %v1275_v6 }
 0x4a5   :  { %vm807_vm13 = vcmp.gt.f32.partialorder %v4409_v62, 1.0  ;;  %v4555_v31 = vpack.c.bf16 %v1282_v41, %v1280_v24  ;;  %v1303_v24 = vld [vmem:[%s5477_s1 + $0x100] sm:$0xff]  ;;  %v1305_v41 = vld [vmem:[%s5477_s1 + $0x110] sm:$0xff] }
 0x4a6   :  { %vm808_vm12 = vcmp.gt.f32.partialorder %v4411_v21, 1.0 }
 0x4a7   :  { %2554 = vmatprep.mubr.msk.f32.mxu0 %vm808_vm12, %v5583_v30  ;;  %5607 = vst [vmem:[#allocation8_spill] sm:$0xff] %v4555_v31 }
 0x4a8   :  { %2555 = vmatmul.mubr.msk.f32.vlgmr.msra.gmra.mrb[4].mxu0 %vm807_vm13, %v5583_v30 }
 0x4a9   :  { %3050 = vmatpush3.bf16.msra.mxu0 %v4206_v48  ;;  %2676 = vmatprep.mubr.msk.f32.mxu0 %vm3445_vm6, %v5582_v42  ;;  %v960_v48 = vmul.f32 0.9048374, %v4215_v45  ;;  %v1079_v45 = vmul.f32 0.9048374, %v4285_v28  ;;  %v1274_v28 = vld [vmem:[%s5477_s1 + $0x18] sm:$0xff] }
 0x4aa   :  { %3051 = vmatprep.subr.bf16.mxu0 %v5518_v58 }
 0x4ad   :  { %3053 = vmatpush3.bf16.msra.mxu0 %v4267_v57  ;;  %v2537_v57 = vsel %vm353_vm5, 1.0, %v5582_v42 }
 0x4ae   :  { %3054 = vmatprep.subr.bf16.mxu0 %v5518_v58 }
 0x57b   :  { %v955_v3 = vpop.f32.mrb[4].mxu0 }
 0x57c   :  { %v956_v7 = vadd.f32 %v955_v3, %v882_v49  ;;  %v957_v8 = vpop.f32.mrb[5].mxu0  ;;  %v1279_v49 = vld [vmem:[%s5477_s1 + $0x40] sm:$0xff]  ;;  %v1284_v3 = vld [vmem:[%s5477_s1 + $0x68] sm:$0xff] }
 0x57d   :  { %v958_v14 = vadd.f32 %v957_v8, %v886_v50  ;;  %v1281_v50 = vld [vmem:[%s5477_s1 + $0x50] sm:$0xff] }
 0x57e   :  { %v962_v19 = vadd.f32 %v960_v48, %v956_v7  ;;  %v1286_v48 = vld [vmem:[%s5477_s1 + $0x78] sm:$0xff]  ;;  %v4570_v7 = vpack.c.bf16 %v1281_v50, %v1279_v49  ;;  %v1308_v49 = vld [vmem:[%s5477_s1 + $0x128] sm:$0xff] }
 0x57f   :  { %v963_v20 = vadd.f32 %v961_v13, %v958_v14  ;;  %v4573_v8 = vpack.c.bf16 %v1286_v48, %v1284_v3  ;;  %v1283_v13 = vld [vmem:[%s5477_s1 + $0x60] sm:$0xff]  ;;  %v1285_v14 = vld [vmem:[%s5477_s1 + $0x70] sm:$0xff]  ;;  %v1310_v50 = vld [vmem:[%s5477_s1 + $0x138] sm:$0xff]  ;;  %v4678_v3 = vpack.c.bf16 %v1305_v41, %v1303_v24 }
 0x580   :  { %v4437_v25 = vsub.f32 %v962_v19, %v2537_v57  ;;  %5608 = vst [vmem:[#allocation9_spill] sm:$0xff] %v4570_v7  ;;  %v1288_v19 = vld [vmem:[%s5477_s1 + $0x88] sm:$0xff]  ;;  %v1290_v57 = vld [vmem:[%s5477_s1 + $0x98] sm:$0xff]  ;;  %v4681_v48 = vpack.c.bf16 %v1310_v50, %v1308_v49  ;;  %v1436_v49 = vld [vmem:[%s5479_s3 + $0x40] sm:$0xff] }
 0x581   :  { %v4440_v26 = vsub.f32 %v963_v20, %v4221_v12  ;;  %5609 = vst [vmem:[#allocation10_spill] sm:$0xff] %v4573_v8  ;;  %v4588_v20 = vpack.c.bf16 %v1285_v14, %v1283_v13  ;;  %5620 = vst [vmem:[#allocation21_spill] sm:$0xff] %v4678_v3  ;;  %v1307_v13 = vld [vmem:[%s5477_s1 + $0x120] sm:$0xff]  ;;  %v1309_v14 = vld [vmem:[%s5477_s1 + $0x130] sm:$0xff] }
 0x582   :  { %vm966_vm15 = vcmp.gt.f32.partialorder %v4437_v25, 1.0  ;;  %5621 = vst [vmem:[#allocation22_spill] sm:$0xff] %v4681_v48  ;;  %v1437_v24 = vld [vmem:[%s5479_s3 + $0x48] sm:$0xff]  ;;  %v1438_v50 = vld [vmem:[%s5479_s3 + $0x50] sm:$0xff] }
 0x583   :  { %vm967_vm14 = vcmp.gt.f32.partialorder %v4440_v26, 1.0  ;;  %5610 = vst [vmem:[#allocation11_spill] sm:$0xff] %v4588_v20 }
 0x584   :  { %v4444_v33 = vsel %vm967_vm14, 1.0, %v5582_v42 }
 0x585   :  { %2559 = vmatprep.mubr.msk.f32.mxu1 %vm393_vm3, %v4444_v33 }
 0x586   :  { %2560 = vmatmul.mubr.msk.f32.vlgmr.msra.gmra.mrb[8].mxu1 %vm966_vm15, %v5583_v30 }
 0x659   :  { %v1075_v52 = vpop.f32.mrb[8].mxu1 }
 0x65a   :  { %v1076_v12 = vadd.f32 %v4276_v59, %v1075_v52  ;;  %v1077_v37 = vpop.f32.mrb[9].mxu1  ;;  %v1272_v59 = vld [vmem:[%s5477_s1 + $0x8] sm:$0xff]  ;;  %v4591_v52 = vpack.c.bf16 %v1290_v57, %v1288_v19  ;;  %v1314_v57 = vld [vmem:[%s5477_s1 + $0x158] sm:$0xff] }
 0x65b   :  { %v1292_v37 = vld [vmem:[%s5477_s1 + $0xa8] sm:$0xff] }
 0x65c   :  { %v1080_v51 = vadd.f32 %v1079_v45, %v1076_v12  ;;  %5611 = vst [vmem:[#allocation12_spill] sm:$0xff] %v4591_v52  ;;  %v1287_v45 = vld [vmem:[%s5477_s1 + $0x80] sm:$0xff]  ;;  %v1289_v12 = vld [vmem:[%s5477_s1 + $0x90] sm:$0xff]  ;;  %v1312_v19 = vld [vmem:[%s5477_s1 + $0x148] sm:$0xff] }
 0x65e   :  { %v4455_v53 = vsub.f32 %v1080_v51, %v4291_v55  ;;  %v4474_v55 = vpack.c.bf16 %v1274_v28, %v1272_v59  ;;  %v1294_v51 = vld [vmem:[%s5477_s1 + $0xb8] sm:$0xff]  ;;  %v4606_v59 = vpack.c.bf16 %v1289_v12, %v1287_v45  ;;  %v4696_v45 = vpack.c.bf16 %v1309_v14, %v1307_v13  ;;  %v1441_v14 = vld [vmem:[%s5479_s3 + $0x68] sm:$0xff] }
 0x65f   :  { %v4609_v28 = vpack.c.bf16 %v1294_v51, %v1292_v37  ;;  %v4699_v12 = vpack.c.bf16 %v1314_v57, %v1312_v19  ;;  %v1311_v37 = vld [vmem:[%s5477_s1 + $0x140] sm:$0xff]  ;;  %v1313_v51 = vld [vmem:[%s5477_s1 + $0x150] sm:$0xff]  ;;  %v4767_v13 = vpack.c.bf16 %v1438_v50, %v1436_v49  ;;  %v1443_v19 = vld [vmem:[%s5479_s3 + $0x78] sm:$0xff] }
 0x660   :  { %vm1082_vm1 = vcmp.gt.f32.partialorder %v4455_v53, 1.0  ;;  %5612 = vst [vmem:[#allocation13_spill] sm:$0xff] %v4606_v59  ;;  %5622 = vst [vmem:[#allocation23_spill] sm:$0xff] %v4696_v45  ;;  %v4714_v1 = vpack.c.bf16 %v1313_v51, %v1311_v37  ;;  %v4777_v57 = vpack.c.bf16 %v1443_v19, %v1441_v14  ;;  %v1440_v37 = vld [vmem:[%s5479_s3 + $0x60] sm:$0xff]  ;;  %v1442_v51 = vld [vmem:[%s5479_s3 + $0x70] sm:$0xff] }
 0x661   :  { %v4459_v0 = vsel %vm1082_vm1, 1.0, %v5582_v42  ;;  %5613 = vst [vmem:[#allocation14_spill] sm:$0xff] %v4609_v28  ;;  %5623 = vst [vmem:[#allocation24_spill] sm:$0xff] %v4699_v12  ;;  %v1448_v14 = vld [vmem:[%s5479_s3 + $0xa0] sm:$0xff]  ;;  %v1450_v19 = vld [vmem:[%s5479_s3 + $0xb0] sm:$0xff] }
 0x662   :  { %2677 = vmatmul.mubr.msk.f32.vlgmr.msra.gmra.mrb[6].mxu0 %vm483_vm7, %v4459_v0  ;;  %5624 = vst [vmem:[#allocation25_spill] sm:$0xff] %v4714_v1 }
 0x663   :  { %3056 = vmatpush3.bf16.msra.mxu0 %v4287_v44  ;;  %2687 = vmatprep.mubr.msk.f32.mxu0 %vm3445_vm6, %v5582_v42  ;;  %v1429_v44 = vld [vmem:[%s5479_s3 + $0x8] sm:$0xff] }
 0x664   :  { %3057 = vmatprep.subr.bf16.mxu0 %v5518_v58 }
 0x667   :  { %3059 = vmatpush3.bf16.msra.mxu0 %v4305_v9  ;;  %v1431_v9 = vld [vmem:[%s5479_s3 + $0x18] sm:$0xff] }
 0x668   :  { %3061 = vmatprep.subr.bf16.mxu0 %v4474_v55  ;;  %v4486_v17 = vpack.c.bf16 %v1431_v9, %v1429_v44  ;;  %v1291_v44 = vld [vmem:[%s5477_s1 + $0xa0] sm:$0xff]  ;;  %v1293_v9 = vld [vmem:[%s5477_s1 + $0xb0] sm:$0xff] }
 0x669   :  { %v4624_v34 = vpack.c.bf16 %v1293_v9, %v1291_v44  ;;  %v1316_v44 = vld [vmem:[%s5477_s1 + $0x168] sm:$0xff]  ;;  %v1318_v9 = vld [vmem:[%s5477_s1 + $0x178] sm:$0xff] }
 0x66a   :  { %3109 = vmatprep.subr.bf16.mxu1 %v4486_v17  ;;  %v4717_v18 = vpack.c.bf16 %v1318_v9, %v1316_v44  ;;  %v4785_v44 = vpack.c.bf16 %v1442_v51, %v1440_v37  ;;  %v1445_v9 = vld [vmem:[%s5479_s3 + $0x88] sm:$0xff]  ;;  %v1455_v51 = vld [vmem:[%s5479_s3 + $0xd8] sm:$0xff] }
 0x66b   :  { %3111 = vmatpush1.bf16.msra.mxu1 %v4497_v2  ;;  %5614 = vst [vmem:[#allocation15_spill] sm:$0xff] %v4624_v34  ;;  %v1453_v37 = vld [vmem:[%s5479_s3 + $0xc8] sm:$0xff] }
 0x66c   :  { %3113 = vmatprep.subr.bf16.mxu1 %v4499_v15  ;;  %5625 = vst [vmem:[#allocation26_spill] sm:$0xff] %v4717_v18 }
 0x735   :  { %v1165_v40 = vpop.f32.mrb[6].mxu0 }
 0x736   :  { %v1166_v27 = vadd.f32 %v4312_v16, %v1165_v40  ;;  %v2678_v29 = vpop.f32.mrb[7].mxu0  ;;  %v1278_v16 = vld [vmem:[%s5477_s1 + $0x38] sm:$0xff]  ;;  %v1295_v40 = vld [vmem:[%s5477_s1 + $0xc0] sm:$0xff] }
 0x737   :  { %v4531_v47 = vpack.c.bf16 %v1278_v16, %v1276_v38  ;;  %v1302_v29 = vld [vmem:[%s5477_s1 + $0xf8] sm:$0xff]  ;;  %v1301_v38 = vld [vmem:[%s5477_s1 + $0xf0] sm:$0xff]  ;;  %v1304_v16 = vld [vmem:[%s5477_s1 + $0x108] sm:$0xff] }
 0x738   :  { %v1170_v54 = vadd.f32 %v1169_v61, %v1166_v27  ;;  %v1297_v61 = vld [vmem:[%s5477_s1 + $0xd0] sm:$0xff]  ;;  %v1300_v27 = vld [vmem:[%s5477_s1 + $0xe8] sm:$0xff]  ;;  %v4660_v6 = vpack.c.bf16 %v1301_v38, %v1299_v23  ;;  %v4739_v23 = vld [vmem:[%s5477_s1 + $0x180] sm:$0xff] }
 0x739   :  { %v4645_v5 = vpack.c.bf16 %v1302_v29, %v1300_v27  ;;  %v4732_v29 = vld [vmem:[%s5477_s1 + $0x188] sm:$0xff]  ;;  %5628 = vst [vmem:[#allocation27_spill] sm:$0xff] %v4739_v23  ;;  %v1432_v38 = vld [vmem:[%s5479_s3 + $0x20] sm:$0xff] }
 0x73a   :  { %v4524_v39 = vsub.f32 %v1170_v54, %v4322_v63  ;;  %v4642_v54 = vpack.c.bf16 %v1297_v61, %v1295_v40  ;;  %5618 = vst [vmem:[#allocation19_spill] sm:$0xff] %v4660_v6  ;;  %v1315_v40 = vld [vmem:[%s5477_s1 + $0x160] sm:$0xff]  ;;  %v1317_v61 = vld [vmem:[%s5477_s1 + $0x170] sm:$0xff]  ;;  %5627 = vst [vmem:[#allocation30_spill] sm:$0xff] %v4732_v29 }
 0x73b   :  { %5617 = vst [vmem:[#allocation18_spill] sm:$0xff] %v4645_v5  ;;  %v4726_v27 = vpack.c.bf16 %v1317_v61, %v1315_v40  ;;  %v1447_v40 = vld [vmem:[%s5479_s3 + $0x98] sm:$0xff]  ;;  %v1444_v61 = vld [vmem:[%s5479_s3 + $0x80] sm:$0xff] }
 0x73c   :  { %vm1172_vm2 = vcmp.gt.f32.partialorder %v4524_v39, 1.0  ;;  %5616 = vst [vmem:[#allocation17_spill] sm:$0xff] %v4642_v54 }
 0x73d   :  { %v4540_v63 = vsel %vm1172_vm2, 1.0, %v5582_v42  ;;  %5626 = vst [vmem:[#allocation29_spill] sm:$0xff] %v4726_v27 }
 0x73e   :  { %2688 = vmatmul.mubr.msk.f32.vlgmr.msra.gmra.mrb[8].mxu0 %vm483_vm7, %v4540_v63 }
 0x73f   :  { %3063 = vmatpush1.bf16.msra.mxu0 %v4526_v56  ;;  %2570 = vmatprep.mubr.msk.f32.mxu0 %vm115_vm0, %v1341_v46  ;;  %v1306_v46 = vld [vmem:[%s5477_s1 + $0x118] sm:$0xff] }
 0x740   :  { %3065 = vmatprep.subr.bf16.mxu0 %v4531_v47  ;;  %v4663_v10 = vpack.c.bf16 %v1306_v46, %v1304_v16  ;;  %v1434_v16 = vld [vmem:[%s5479_s3 + $0x30] sm:$0xff] }
 0x741   :  { %v4750_v46 = vpack.c.bf16 %v1434_v16, %v1432_v38  ;;  %v4797_v38 = vpack.c.bf16 %v1447_v40, %v1445_v9  ;;  %v1446_v16 = vld [vmem:[%s5479_s3 + $0x90] sm:$0xff]  ;;  %v4827_v9 = vpack.c.bf16 %v1450_v19, %v1448_v14  ;;  %v4830_v40 = vpack.c.bf16 %v1455_v51, %v1453_v37  ;;  %v1456_v37 = vld [vmem:[%s5479_s3 + $0xe0] sm:$0xff] }
 0x742   :  { %5619 = vst [vmem:[#allocation20_spill] sm:$0xff] %v4663_v10  ;;  %v4809_v49 = vpack.c.bf16 %v1446_v16, %v1444_v61  ;;  %v1452_v61 = vld [vmem:[%s5479_s3 + $0xc0] sm:$0xff]  ;;  %v1454_v16 = vld [vmem:[%s5479_s3 + $0xd0] sm:$0xff] }
 0x743   :  { %3067 = vmatpush1.bf16.msra.mxu0 %v4551_v60  ;;  %3115 = vmatpush1.bf16.msra.mxu1 %v4750_v46  ;;  %v4845_v14 = vpack.c.bf16 %v1454_v16, %v1452_v61  ;;  %v1458_v51 = vld [vmem:[%s5479_s3 + $0xf0] sm:$0xff]  ;;  %v1463_v61 = vld [vmem:[%s5479_s3 + $0x118] sm:$0xff] }
 0x744   :  { %3069 = vmatprep.subr.bf16.mxu0 %v4555_v31  ;;  %v4863_v16 = vpack.c.bf16 %v1458_v51, %v1456_v37  ;;  %v1467_v37 = vld [vmem:[%s5479_s3 + $0x138] sm:$0xff] }
 0x747   :  { %3071 = vmatpush1.bf16.msra.mxu0 %v4570_v7 }
 0x748   :  { %3073 = vmatprep.subr.bf16.mxu0 %v4573_v8 }
 0x74b   :  { %3075 = vmatpush1.bf16.msra.mxu0 %v4588_v20  ;;  %v1592_v20 = vld [vmem:[%s5481_s5 + $0x28] sm:$0xff] }
 0x74c   :  { %3077 = vmatprep.subr.bf16.mxu0 %v4591_v52  ;;  %v1591_v52 = vld [vmem:[%s5481_s5 + $0x20] sm:$0xff] }
 0x74f   :  { %3079 = vmatpush1.bf16.msra.mxu0 %v4606_v59 }
 0x750   :  { %3081 = vmatprep.subr.bf16.mxu0 %v4609_v28  ;;  %v1589_v28 = vld [vmem:[%s5481_s5 + $0x10] sm:$0xff] }
 0x753   :  { %3083 = vmatpush1.bf16.msra.mxu0 %v4624_v34  ;;  %v5629_v34 = vmov 0.0|0.0  }
 0x754   :  { %3085 = vmatprep.subr.bf16.mxu0 %v4627_v35  ;;  %v1488_v35 = vld [vmem:[%s5479_s3 + $0x1e0] sm:$0xff] }
 0x757   :  { %3087 = vmatpush1.bf16.msra.mxu0 %v4642_v54  ;;  %v1489_v54 = vld [vmem:[%s5479_s3 + $0x1e8] sm:$0xff] }
 0x758   :  { %3089 = vmatprep.subr.bf16.mxu0 %v4645_v5 }
 0x75b   :  { %3091 = vmatpush1.bf16.msra.mxu0 %v4660_v6  ;;  %v1482_v6 = vld [vmem:[%s5479_s3 + $0x1b0] sm:$0xff] }
 0x75c   :  { %3093 = vmatprep.subr.bf16.mxu0 %v4663_v10  ;;  %v1481_v10 = vld [vmem:[%s5479_s3 + $0x1a8] sm:$0xff] }
 0x75f   :  { %3095 = vmatpush1.bf16.msra.mxu0 %v4678_v3  ;;  %v1478_v3 = vld [vmem:[%s5479_s3 + $0x190] sm:$0xff] }
 0x760   :  { %3097 = vmatprep.subr.bf16.mxu0 %v4681_v48  ;;  %v1477_v48 = vld [vmem:[%s5479_s3 + $0x188] sm:$0xff] }
 0x763   :  { %3099 = vmatpush1.bf16.msra.mxu0 %v4696_v45  ;;  %v1474_v45 = vld [vmem:[%s5479_s3 + $0x170] sm:$0xff] }
 0x764   :  { %3101 = vmatprep.subr.bf16.mxu0 %v4699_v12  ;;  %v1473_v12 = vld [vmem:[%s5479_s3 + $0x168] sm:$0xff] }
 0x767   :  { %3103 = vmatpush1.bf16.msra.mxu0 %v4714_v1  ;;  %v1470_v1 = vld [vmem:[%s5479_s3 + $0x150] sm:$0xff] }
 0x768   :  { %3105 = vmatprep.subr.bf16.mxu0 %v4717_v18  ;;  %v1469_v18 = vld [vmem:[%s5479_s3 + $0x148] sm:$0xff] }
 0x76b   :  { %3107 = vmatpush1.bf16.msra.mxu0 %v4726_v27  ;;  %v1466_v27 = vld [vmem:[%s5479_s3 + $0x130] sm:$0xff] }
 0x76c   :  { %1393 = vmatprep.subr.mxu0 %v4732_v29  ;;  %v1465_v29 = vld [vmem:[%s5479_s3 + $0x128] sm:$0xff] }
 0x76d   :  { %v4884_v51 = vpack.c.bf16 %v1467_v37, %v1465_v29  ;;  %v1468_v37 = vld [vmem:[%s5479_s3 + $0x140] sm:$0xff] }
 0x76f   :  { %1394 = vmatpush1.msra.mxu0 %v4739_v23  ;;  %v1462_v23 = vld [vmem:[%s5479_s3 + $0x110] sm:$0xff] }
 0x770   :  { %1410 = vmatmul.mubr.f32.vlgmr.msra.gmra.mrb[10].mxu0 %v4515_v32  ;;  %3172 = vmatprep.subr.bf16.mxu0 %v5518_v58  ;;  %v1439_v32 = vld [vmem:[%s5479_s3 + $0x58] sm:$0xff]  ;;  %v1461_v58 = vld [vmem:[%s5479_s3 + $0x108] sm:$0xff] }
 0x771   :  { %v4759_v41 = vpack.c.bf16 %v1439_v32, %v1437_v24  ;;  %v1449_v24 = vld [vmem:[%s5479_s3 + $0xa8] sm:$0xff]  ;;  %v1451_v32 = vld [vmem:[%s5479_s3 + $0xb8] sm:$0xff] }
 0x772   :  { %v4812_v50 = vpack.c.bf16 %v1451_v32, %v1449_v24  ;;  %v1457_v24 = vld [vmem:[%s5479_s3 + $0xe8] sm:$0xff]  ;;  %v1459_v32 = vld [vmem:[%s5479_s3 + $0xf8] sm:$0xff] }
 0x773   :  { %3117 = vmatprep.subr.bf16.mxu1 %v4759_v41  ;;  %v4848_v19 = vpack.c.bf16 %v1459_v32, %v1457_v24  ;;  %v4866_v24 = vpack.c.bf16 %v1463_v61, %v1461_v58  ;;  %v1460_v32 = vld [vmem:[%s5479_s3 + $0x100] sm:$0xff] }
 0x774   :  { %3119 = vmatpush1.bf16.msra.mxu1 %v4767_v13  ;;  %v4881_v58 = vpack.c.bf16 %v1462_v23, %v1460_v32  ;;  %v1464_v61 = vld [vmem:[%s5479_s3 + $0x120] sm:$0xff]  ;;  %v1471_v23 = vld [vmem:[%s5479_s3 + $0x158] sm:$0xff] }
 0x775   :  { %3121 = vmatprep.subr.bf16.mxu1 %v4777_v57  ;;  %v4899_v29 = vpack.c.bf16 %v1466_v27, %v1464_v61  ;;  %v4902_v32 = vpack.c.bf16 %v1471_v23, %v1469_v18  ;;  %v1475_v27 = vld [vmem:[%s5479_s3 + $0x178] sm:$0xff]  ;;  %v4917_v18 = vpack.c.bf16 %v1470_v1, %v1468_v37  ;;  %v1472_v23 = vld [vmem:[%s5479_s3 + $0x160] sm:$0xff] }
 0x776   :  { %v4920_v61 = vpack.c.bf16 %v1475_v27, %v1473_v12  ;;  %v1479_v1 = vld [vmem:[%s5479_s3 + $0x198] sm:$0xff]  ;;  %v4935_v12 = vpack.c.bf16 %v1474_v45, %v1472_v23  ;;  %v1476_v27 = vld [vmem:[%s5479_s3 + $0x180] sm:$0xff] }
 0x777   :  { %v4938_v37 = vpack.c.bf16 %v1479_v1, %v1477_v48  ;;  %v1483_v45 = vld [vmem:[%s5479_s3 + $0x1b8] sm:$0xff]  ;;  %v4953_v48 = vpack.c.bf16 %v1478_v3, %v1476_v27  ;;  %v1480_v1 = vld [vmem:[%s5479_s3 + $0x1a0] sm:$0xff] }
 0x778   :  { %3123 = vmatpush1.bf16.msra.mxu1 %v4785_v44  ;;  %v4956_v23 = vpack.c.bf16 %v1483_v45, %v1481_v10  ;;  %v4965_v5 = vpack.c.bf16 %v1482_v6, %v1480_v1  ;;  %v1485_v10 = vld [vmem:[%s5479_s3 + $0x1c8] sm:$0xff]  ;;  %v1487_v3 = vld [vmem:[%s5479_s3 + $0x1d8] sm:$0xff]  ;;  %v1484_v45 = vld [vmem:[%s5479_s3 + $0x1c0] sm:$0xff] }
 0x779   :  { %3125 = vmatprep.subr.bf16.mxu1 %v4797_v38  ;;  %v4975_v27 = vpack.c.bf16 %v1487_v3, %v1485_v10  ;;  %v1486_v6 = vld [vmem:[%s5479_s3 + $0x1d0] sm:$0xff]  ;;  %v1491_v10 = vld [vmem:[%s5479_s3 + $0x1f8] sm:$0xff] }
 0x77a   :  { %v4983_v1 = vpack.c.bf16 %v1486_v6, %v1484_v45  ;;  %v4993_v3 = vpack.c.bf16 %v1491_v10, %v1489_v54  ;;  %v1490_v45 = vld [vmem:[%s5479_s3 + $0x1f0] sm:$0xff]  ;;  %v1587_v54 = vld [vmem:[%s5481_s5] sm:$0xff]  ;;  %v1588_v10 = vld [vmem:[%s5481_s5 + $0x8] sm:$0xff] }
 0x77b   :  { %v5001_v6 = vpack.c.bf16 %v1490_v45, %v1488_v35  ;;  %v5015_v35 = vpack.c.bf16 %v1588_v10, %v1587_v54  ;;  %v1590_v45 = vld [vmem:[%s5481_s5 + $0x18] sm:$0xff]  ;;  %v5031_v54 = vpack.c.bf16 %v1592_v20, %v1591_v52  ;;  %v1595_v20 = vld [vmem:[%s5481_s5 + $0x40] sm:$0xff]  ;;  %v1596_v52 = vld [vmem:[%s5481_s5 + $0x48] sm:$0xff] }
 0x77c   :  { %3127 = vmatpush1.bf16.msra.mxu1 %v4809_v49  ;;  %v5021_v59 = vpack.c.bf16 %v1590_v45, %v1589_v28  ;;  %v1593_v28 = vld [vmem:[%s5481_s5 + $0x30] sm:$0xff]  ;;  %v1594_v10 = vld [vmem:[%s5481_s5 + $0x38] sm:$0xff] }
 0x77d   :  { %3129 = vmatprep.subr.bf16.mxu1 %v4812_v50  ;;  %5630 = vst [vmem:[#allocation28_spill] sm:$0xff] %v5015_v35  ;;  %3174 = vmatpush1.bf16.msra.mxu0 %v5015_v35  ;;  %5632 = vst [vmem:[#allocation32_spill] sm:$0xff] %v5031_v54  ;;  %v5041_v45 = vpack.c.bf16 %v1594_v10, %v1593_v28  ;;  %v1597_v28 = vld [vmem:[%s5481_s5 + $0x50] sm:$0xff]  ;;  %v1598_v10 = vld [vmem:[%s5481_s5 + $0x58] sm:$0xff] }
 0x77e   :  { %5631 = vst [vmem:[#allocation31_spill] sm:$0xff] %v5021_v59  ;;  %3175 = vmatprep.subr.bf16.mxu0 %v5629_v34 }
 0x77f   :  { %5633 = vst [vmem:[#allocation33_spill] sm:$0xff] %v5041_v45 }
 0x780   :  { %3131 = vmatpush1.bf16.msra.mxu1 %v4827_v9 }
 0x781   :  { %3133 = vmatprep.subr.bf16.mxu1 %v4830_v40  ;;  %3177 = vmatpush1.bf16.msra.mxu0 %v5021_v59  ;;  %v5051_v59 = vpack.c.bf16 %v1596_v52, %v1595_v20  ;;  %v1599_v20 = vld [vmem:[%s5481_s5 + $0x60] sm:$0xff]  ;;  %v1600_v52 = vld [vmem:[%s5481_s5 + $0x68] sm:$0xff] }
 0x782   :  { %3178 = vmatprep.subr.bf16.mxu0 %v5629_v34 }
 0x783   :  { %5634 = vst [vmem:[#allocation34_spill] sm:$0xff] %v5051_v59 }
 0x784   :  { %3135 = vmatpush1.bf16.msra.mxu1 %v4845_v14 }
 0x785   :  { %3137 = vmatprep.subr.bf16.mxu1 %v4848_v19  ;;  %3180 = vmatpush1.bf16.msra.mxu0 %v5031_v54  ;;  %v5061_v54 = vpack.c.bf16 %v1598_v10, %v1597_v28  ;;  %v1601_v28 = vld [vmem:[%s5481_s5 + $0x70] sm:$0xff]  ;;  %v1602_v10 = vld [vmem:[%s5481_s5 + $0x78] sm:$0xff] }
 0x786   :  { %3181 = vmatprep.subr.bf16.mxu0 %v5629_v34 }
 0x787   :  { %5635 = vst [vmem:[#allocation35_spill] sm:$0xff] %v5061_v54 }
 0x788   :  { %3139 = vmatpush1.bf16.msra.mxu1 %v4863_v16 }
 0x789   :  { %3141 = vmatprep.subr.bf16.mxu1 %v4866_v24  ;;  %3183 = vmatpush1.bf16.msra.mxu0 %v5041_v45  ;;  %v5071_v45 = vpack.c.bf16 %v1600_v52, %v1599_v20  ;;  %v1603_v20 = vld [vmem:[%s5481_s5 + $0x80] sm:$0xff]  ;;  %v1604_v52 = vld [vmem:[%s5481_s5 + $0x88] sm:$0xff] }
 0x78a   :  { %3184 = vmatprep.subr.bf16.mxu0 %v5629_v34 }
 0x78b   :  { %5636 = vst [vmem:[#allocation36_spill] sm:$0xff] %v5071_v45 }
 0x78c   :  { %3143 = vmatpush1.bf16.msra.mxu1 %v4881_v58 }
 0x78d   :  { %3145 = vmatprep.subr.bf16.mxu1 %v4884_v51  ;;  %3186 = vmatpush1.bf16.msra.mxu0 %v5051_v59  ;;  %v5081_v59 = vpack.c.bf16 %v1602_v10, %v1601_v28  ;;  %v1605_v28 = vld [vmem:[%s5481_s5 + $0x90] sm:$0xff]  ;;  %v1606_v10 = vld [vmem:[%s5481_s5 + $0x98] sm:$0xff] }
 0x78e   :  { %3187 = vmatprep.subr.bf16.mxu0 %v5629_v34 }
 0x78f   :  { %5637 = vst [vmem:[#allocation37_spill] sm:$0xff] %v5081_v59 }
 0x790   :  { %3147 = vmatpush1.bf16.msra.mxu1 %v4899_v29 }
 0x791   :  { %3149 = vmatprep.subr.bf16.mxu1 %v4902_v32  ;;  %3189 = vmatpush1.bf16.msra.mxu0 %v5061_v54  ;;  %v5091_v54 = vpack.c.bf16 %v1604_v52, %v1603_v20  ;;  %v1607_v20 = vld [vmem:[%s5481_s5 + $0xa0] sm:$0xff]  ;;  %v1608_v52 = vld [vmem:[%s5481_s5 + $0xa8] sm:$0xff] }
 0x792   :  { %3190 = vmatprep.subr.bf16.mxu0 %v5629_v34 }
 0x793   :  { %5638 = vst [vmem:[#allocation38_spill] sm:$0xff] %v5091_v54 }
 0x794   :  { %3151 = vmatpush1.bf16.msra.mxu1 %v4917_v18 }
 0x795   :  { %3153 = vmatprep.subr.bf16.mxu1 %v4920_v61  ;;  %3192 = vmatpush1.bf16.msra.mxu0 %v5071_v45  ;;  %v5101_v45 = vpack.c.bf16 %v1606_v10, %v1605_v28 }
 0x796   :  { %3193 = vmatprep.subr.bf16.mxu0 %v5629_v34 }
 0x797   :  { %5639 = vst [vmem:[#allocation39_spill] sm:$0xff] %v5101_v45 }
 0x798   :  { %3155 = vmatpush1.bf16.msra.mxu1 %v4935_v12 }
 0x799   :  { %3157 = vmatprep.subr.bf16.mxu1 %v4938_v37  ;;  %3195 = vmatpush1.bf16.msra.mxu0 %v5081_v59  ;;  %v5111_v59 = vpack.c.bf16 %v1608_v52, %v1607_v20 }
 0x79a   :  { %3196 = vmatprep.subr.bf16.mxu0 %v5629_v34 }
 0x79b   :  { %5640 = vst [vmem:[#allocation40_spill] sm:$0xff] %v5111_v59 }
 0x79c   :  { %3159 = vmatpush1.bf16.msra.mxu1 %v4953_v48 }
 0x79d   :  { %3161 = vmatprep.subr.bf16.mxu1 %v4956_v23  ;;  %3198 = vmatpush1.bf16.msra.mxu0 %v5091_v54  ;;  %v1259_v54 = vmul.f32 0.9048374, %v4386_v43 }
 0x79e   :  { %3199 = vmatprep.subr.bf16.mxu0 %v5629_v34 }
 0x7a0   :  { %3163 = vmatpush1.bf16.msra.mxu1 %v4965_v5 }
 0x7a1   :  { %3165 = vmatprep.subr.bf16.mxu1 %v4975_v27  ;;  %3201 = vmatpush1.bf16.msra.mxu0 %v5101_v45  ;;  %v2553_v45 = vsel %vm808_vm12, 1.0, %v5582_v42 }
 0x7a2   :  { %3202 = vmatprep.subr.bf16.mxu0 %v5629_v34 }
 0x7a4   :  { %3167 = vmatpush1.bf16.msra.mxu1 %v4983_v1 }
 0x7a5   :  { %3169 = vmatprep.subr.bf16.mxu1 %v4993_v3  ;;  %3204 = vmatpush1.bf16.msra.mxu0 %v5111_v59 }
 0x7a6   :  { %3205 = vmatprep.subr.bf16.mxu0 %v5629_v34 }
 0x7a8   :  { %3171 = vmatpush1.bf16.msra.mxu1 %v5001_v6 }
 0x7a9   :  { %3211 = vmatprep.subr.bf16.mxu1 %v5629_v34 }
 0x811   :  { %v1255_v28 = vpop.f32.mrb[8].mxu0 }
 0x812   :  { %v1256_v10 = vadd.f32 %v4383_v22, %v1255_v28  ;;  %v2689_v35 = vpop.f32.mrb[9].mxu0  ;;  %v1321_v22 = vld [vmem:[%s5478_s2] sm:$0x3] }
 0x813   :  { %v1326_v43 = vrot.slane %v1321_v22, %v4162_v36 }
 0x814   :  { %v1260_v8 = vadd.f32 %v1259_v54, %v1256_v10  ;;  %v1416_v54 = vmul.f32 0.9048374, %v4409_v62  ;;  %v1417_v10 = vmul.f32 0.9048374, %v4411_v21  ;;  %v1609_v62 = vld [vmem:[%s5481_s5 + $0xb0] sm:$0xff]  ;;  %v1610_v21 = vld [vmem:[%s5481_s5 + $0xb8] sm:$0xff] }
 0x816   :  { %v5119_v7 = vsub.f32 %v1260_v8, %v4392_v4  ;;  %v1330_v4 = vrot.slane %v1321_v22, %v4167_v11 }
 0x818   :  { %5641 = vst [vmem:[#allocation41_spill] sm:$0xff] %v5119_v7  ;;  %1268 = vst.msk [vmem:[#allocation4 + $0x2] sm:$0x3] %vm651_vm10, %v5119_v7  ;;  %vm1262_vm4 = vcmp.gt.f32.partialorder %v5119_v7, 1.0 }
 0x819   :  { %v5125_v20 = vsel %vm1262_vm4, 1.0, %v5582_v42 }
 0x81a   :  { %5642 = vst [vmem:[#allocation42_spill] sm:$0xff] %v5125_v20  ;;  %1266 = vst.msk [vmem:[#allocation2 + $0x2] sm:$0x3] %vm651_vm10, %v5125_v20  ;;  %v2552_v20 = vsel %vm807_vm13, 1.0, %v5582_v42 }
 0x843   :  { %v1411_v8 = vpop.f32.mrb[10].mxu0 }
 0x844   :  { %v1412_v35 = vadd.f32 %v1411_v8, %v1326_v43  ;;  %v1413_v52 = vpop.f32.mrb[11].mxu0  ;;  %v5179_v43 = vld [vmem:[%s5481_s5 + $0xd0] sm:$0xff] }
 0x845   :  { %v1414_v28 = vadd.f32 %v1413_v52, %v1330_v4  ;;  %v1492_v4 = vld [vmem:[%s5480_s4] sm:$0x3] }
 0x846   :  { %v1418_v7 = vadd.f32 %v1416_v54, %v1412_v35  ;;  %v1497_v8 = vrot.slane %v1492_v4, %v4162_v36  ;;  %v1501_v35 = vrot.slane %v1492_v4, %v4167_v11 }
 0x847   :  { %v1419_v59 = vadd.f32 %v1417_v10, %v1414_v28  ;;  %v1575_v28 = vmul.f32 0.9048374, %v4437_v25  ;;  %v1700_v25 = vld [vmem:[%s5483_s7] sm:$0xff] }
 0x848   :  { %v5142_v31 = vsub.f32 %v1418_v7, %v2552_v20  ;;  %v5162_v7 = vpack.c.bf16 %v1610_v21, %v1609_v62  ;;  %v1576_v21 = vmul.f32 0.9048374, %v4440_v26  ;;  %v1701_v26 = vld [vmem:[%s5483_s7 + $0x8] sm:$0xff] }
 0x849   :  { %v5144_v22 = vsub.f32 %v1419_v59, %v2553_v45  ;;  %v1611_v59 = vld [vmem:[%s5481_s5 + $0xc0] sm:$0xff]  ;;  %v1612_v45 = vld [vmem:[%s5481_s5 + $0xc8] sm:$0xff] }
 0x84a   :  { %5643 = vst [vmem:[#allocation43_spill] sm:$0xff] %v5142_v31  ;;  %vm1422_vm8 = vcmp.gt.f32.partialorder %v5142_v31, 1.0  ;;  %3207 = vmatpush1.bf16.msra.mxu0 %v5162_v7  ;;  %v5172_v20 = vpack.c.bf16 %v1612_v45, %v1611_v59 }
 0x84b   :  { %5644 = vst [vmem:[#allocation44_spill] sm:$0xff] %v5144_v22  ;;  %vm1423_vm5 = vcmp.gt.f32.partialorder %v5144_v22, 1.0  ;;  %3208 = vmatprep.subr.bf16.mxu0 %v5629_v34 }
 0x84c   :  { %2573 = vmatprep.mubr.msk.f32.mxu1 %vm1423_vm5, %v5583_v30 }
 0x84d   :  { %2574 = vmatmul.mubr.msk.f32.vlgmr.msra.gmra.mrb[10].mxu1 %vm1422_vm8, %v5583_v30 }
 0x84e   :  { %2698 = vmatprep.mubr.msk.f32.mxu1 %vm3445_vm6, %v5582_v42  ;;  %3210 = vmatpush1.bf16.msra.mxu0 %v5172_v20 }
 0x84f   :  { %1676 = vmatprep.subr.mxu0 %v5582_v42 }
 0x852   :  { %1677 = vmatpush1.msra.mxu0 %v5179_v43 }
 0x853   :  { %3272 = vmatprep.subr.bf16.mxu0 %v4486_v17  ;;  %v2556_v17 = vsel %vm966_vm15, 1.0, %v5582_v42 }
 0x920   :  { %v1570_v54 = vpop.f32.mrb[10].mxu1 }
 0x921   :  { %v1571_v52 = vadd.f32 %v1570_v54, %v1497_v8  ;;  %v1572_v10 = vpop.f32.mrb[11].mxu1  ;;  %v5657_v8 = vld [vmem:[#allocation20_spill] sm:$0xff]  ;;  %v5659_v54 = vld [vmem:[#allocation22_spill] sm:$0xff] }
 0x922   :  { %v1573_v62 = vadd.f32 %v1572_v10, %v1501_v35  ;;  %v5658_v35 = vld [vmem:[#allocation21_spill] sm:$0xff] }
 0x923   :  { %v1577_v59 = vadd.f32 %v1575_v28, %v1571_v52  ;;  %v5660_v52 = vld [vmem:[#allocation23_spill] sm:$0xff]  ;;  %v5661_v28 = vld [vmem:[#allocation24_spill] sm:$0xff]  ;;  %v5662_v10 = vld [vmem:[#allocation25_spill] sm:$0xff] }
 0x924   :  { %v1578_v45 = vadd.f32 %v1576_v21, %v1573_v62  ;;  %v5663_v62 = vld [vmem:[#allocation26_spill] sm:$0xff]  ;;  %v5664_v21 = vld [vmem:[#allocation29_spill] sm:$0xff] }
 0x925   :  { %v5193_v22 = vsub.f32 %v1577_v59, %v2556_v17  ;;  %v5665_v59 = vld [vmem:[#allocation30_spill] sm:$0xff]  ;;  %v5666_v17 = vld [vmem:[#allocation27_spill] sm:$0xff] }
 0x926   :  { %v5196_v31 = vsub.f32 %v1578_v45, %v4444_v33  ;;  %v5246_v33 = vpack.c.bf16 %v1701_v26, %v1700_v25  ;;  %v5667_v45 = vld [vmem:[#allocation28_spill] sm:$0xff]  ;;  %v5668_v25 = vld [vmem:[#allocation31_spill] sm:$0xff] }
 0x927   :  { %vm1581_vm11 = vcmp.gt.f32.partialorder %v5193_v22, 1.0  ;;  %v5669_v26 = vld [vmem:[#allocation32_spill] sm:$0xff] }
 0x928   :  { %vm1582_vm9 = vcmp.gt.f32.partialorder %v5196_v31, 1.0  ;;  %3213 = vmatpush3.bf16.msra.mxu1 %v5246_v33 }
 0x929   :  { %v5200_v4 = vsel %vm1582_vm9, 1.0, %v5582_v42  ;;  %3214 = vmatprep.subr.bf16.mxu1 %v5629_v34 }
 0x92a   :  { %2578 = vmatprep.mubr.msk.f32.mxu0 %vm393_vm3, %v5200_v4 }
 0x92b   :  { %2579 = vmatmul.mubr.msk.f32.vlgmr.msra.gmra.mrb[12].mxu0 %vm1581_vm11, %v5583_v30 }
 0x92c   :  { %3274 = vmatpush1.bf16.msra.mxu0 %v4497_v2  ;;  %v1702_v2 = vld [vmem:[%s5483_s7 + $0x10] sm:$0xff] }
 0x92d   :  { %3276 = vmatprep.subr.bf16.mxu0 %v4499_v15  ;;  %v1703_v15 = vld [vmem:[%s5483_s7 + $0x18] sm:$0xff] }
 0x930   :  { %3278 = vmatpush1.bf16.msra.mxu0 %v4750_v46  ;;  %v5263_v46 = vld [vmem:[%s5482_s6] ss:$0 sm:$0xff] }
 0x931   :  { %3280 = vmatprep.subr.bf16.mxu0 %v4759_v41 }
 0x934   :  { %3282 = vmatpush1.bf16.msra.mxu0 %v4767_v13 }
 0x935   :  { %3284 = vmatprep.subr.bf16.mxu0 %v4777_v57  ;;  %v1694_v57 = vmul.f32 0.9048374, %v4455_v53  ;;  %v1790_v53 = vld [vmem:[%s5485_s9] sm:$0xff] }
 0x938   :  { %3286 = vmatpush1.bf16.msra.mxu0 %v4785_v44 }
 0x939   :  { %3288 = vmatprep.subr.bf16.mxu0 %v4797_v38 }
 0x93c   :  { %3290 = vmatpush1.bf16.msra.mxu0 %v4809_v49 }
 0x93d   :  { %3292 = vmatprep.subr.bf16.mxu0 %v4812_v50 }
 0x940   :  { %3294 = vmatpush1.bf16.msra.mxu0 %v4827_v9 }
 0x941   :  { %3296 = vmatprep.subr.bf16.mxu0 %v4830_v40  ;;  %v1792_v40 = vld [vmem:[%s5485_s9 + $0x10] sm:$0xff] }
 0x944   :  { %3298 = vmatpush1.bf16.msra.mxu0 %v4845_v14  ;;  %v1793_v14 = vld [vmem:[%s5485_s9 + $0x18] sm:$0xff] }
 0x945   :  { %3300 = vmatprep.subr.bf16.mxu0 %v4848_v19  ;;  %v5294_v19 = vpack.c.bf16 %v1793_v14, %v1792_v40 }
 0x948   :  { %3302 = vmatpush1.bf16.msra.mxu0 %v4863_v16  ;;  %v5301_v16 = vld [vmem:[%s5484_s8] ss:$0 sm:$0xff] }
 0x949   :  { %3304 = vmatprep.subr.bf16.mxu0 %v4866_v24 }
 0x94c   :  { %3306 = vmatpush1.bf16.msra.mxu0 %v4881_v58 }
 0x94d   :  { %3308 = vmatprep.subr.bf16.mxu0 %v4884_v51  ;;  %v1784_v51 = vmul.f32 0.9048374, %v4524_v39  ;;  %v5645_v39 = vld [vmem:[#allocation8_spill] sm:$0xff] }
 0x950   :  { %3310 = vmatpush1.bf16.msra.mxu0 %v4899_v29 }
 0x951   :  { %3312 = vmatprep.subr.bf16.mxu0 %v4902_v32 }
 0x954   :  { %3314 = vmatpush1.bf16.msra.mxu0 %v4917_v18  ;;  %v2588_v18 = vld.sshfl [vmem:[%s5476_s0 + $0xc] sm:$0x33 pattern:$0x76325410] }
 0x955   :  { %3316 = vmatprep.subr.bf16.mxu0 %v4920_v61 }
 0x958   :  { %3318 = vmatpush1.bf16.msra.mxu0 %v4935_v12 }
 0x959   :  { %3320 = vmatprep.subr.bf16.mxu0 %v4938_v37  ;;  %v5647_v37 = vld [vmem:[#allocation10_spill] sm:$0xff] }
 0x95c   :  { %3322 = vmatpush1.bf16.msra.mxu0 %v4953_v48  ;;  %v5648_v48 = vld [vmem:[#allocation11_spill] sm:$0xff] }
 0x95d   :  { %3324 = vmatprep.subr.bf16.mxu0 %v4956_v23  ;;  %v5649_v23 = vld [vmem:[#allocation12_spill] sm:$0xff] }
 0x960   :  { %3326 = vmatpush1.bf16.msra.mxu0 %v4965_v5  ;;  %v5256_v5 = vpack.c.bf16 %v1703_v15, %v1702_v2  ;;  %v5670_v2 = vld [vmem:[#allocation33_spill] sm:$0xff]  ;;  %v5671_v15 = vld [vmem:[#allocation34_spill] sm:$0xff] }
 0x961   :  { %3328 = vmatprep.subr.bf16.mxu0 %v4975_v27  ;;  %v5650_v27 = vld [vmem:[#allocation13_spill] sm:$0xff] }
 0x962   :  { %3216 = vmatpush3.bf16.msra.mxu1 %v5256_v5 }
 0x963   :  { %3217 = vmatprep.subr.bf16.mxu1 %v5629_v34 }
 0x964   :  { %3330 = vmatpush1.bf16.msra.mxu0 %v4983_v1  ;;  %v5651_v1 = vld [vmem:[#allocation14_spill] sm:$0xff] }
 0x965   :  { %3332 = vmatprep.subr.bf16.mxu0 %v4993_v3  ;;  %v5653_v3 = vld [vmem:[#allocation16_spill] sm:$0xff] }
 0x968   :  { %3334 = vmatpush1.bf16.msra.mxu0 %v5001_v6  ;;  %v5656_v6 = vld [vmem:[#allocation19_spill] sm:$0xff] }
 0x969   :  { %3374 = vmatprep.subr.bf16.mxu0 %v5629_v34 }
 0x9fe   :  { %v1690_v41 = vpop.f32.mrb[12].mxu0 }
 0x9ff   :  { %v1691_v13 = vadd.f32 %v5263_v46, %v1690_v41  ;;  %v1692_v44 = vpop.f32.mrb[13].mxu0  ;;  %v5672_v41 = vld [vmem:[#allocation35_spill] sm:$0xff] }
 0xa00   :  { %v5675_v44 = vld [vmem:[#allocation38_spill] sm:$0xff] }
 0xa01   :  { %v1695_v38 = vadd.f32 %v1694_v57, %v1691_v13  ;;  %v5673_v13 = vld [vmem:[#allocation36_spill] sm:$0xff]  ;;  %v5674_v57 = vld [vmem:[#allocation37_spill] sm:$0xff] }
 0xa03   :  { %v5268_v49 = vsub.f32 %v1695_v38, %v4459_v0  ;;  %v1791_v0 = vld [vmem:[%s5485_s9 + $0x8] sm:$0xff] }
 0xa04   :  { %v5284_v9 = vpack.c.bf16 %v1791_v0, %v1790_v53  ;;  %v5676_v38 = vld [vmem:[#allocation39_spill] sm:$0xff]  ;;  %v5677_v53 = vld [vmem:[#allocation40_spill] sm:$0xff]  ;;  %v5374_v0 = vld [vmem:[%s5486_s10] ss:$0 sm:$0xff] }
 0xa05   :  { %vm1697_vm12 = vcmp.gt.f32.partialorder %v5268_v49, 1.0 }
 0xa06   :  { %v5272_v50 = vsel %vm1697_vm12, 1.0, %v5582_v42 }
 0xa07   :  { %2699 = vmatmul.mubr.msk.f32.vlgmr.msra.gmra.mrb[12].mxu1 %vm483_vm7, %v5272_v50 }
 0xa08   :  { %2709 = vmatprep.mubr.msk.f32.mxu1 %vm3445_vm6, %v5582_v42  ;;  %3219 = vmatpush3.bf16.msra.mxu1 %v5284_v9 }
 0xa09   :  { %3220 = vmatprep.subr.bf16.mxu1 %v5629_v34 }
 0xa0c   :  { %3222 = vmatpush3.bf16.msra.mxu1 %v5294_v19 }
 0xa0d   :  { %3224 = vmatprep.subr.bf16.mxu1 %v4474_v55  ;;  %v1956_v55 = vcombine.high %v2588_v18, %v2588_v18 }
 0xada   :  { %v1780_v24 = vpop.f32.mrb[12].mxu1 }
 0xadb   :  { %v1781_v58 = vadd.f32 %v5301_v16, %v1780_v24  ;;  %v2700_v29 = vpop.f32.mrb[13].mxu1  ;;  %v5678_v24 = vld [vmem:[#allocation41_spill] sm:$0xff] }
 0xadc   :  { %v5679_v29 = vld [vmem:[#allocation42_spill] sm:$0xff] }
 0xadd   :  { %v1785_v32 = vadd.f32 %v1784_v51, %v1781_v58  ;;  %v1874_v58 = vmul.f32 0.9048374, %v5678_v24 }
 0xadf   :  { %v5309_v61 = vsub.f32 %v1785_v32, %v4540_v63  ;;  %v5646_v63 = vld [vmem:[#allocation9_spill] sm:$0xff] }
 0xae1   :  { %vm1787_vm13 = vcmp.gt.f32.partialorder %v5309_v61, 1.0 }
 0xae2   :  { %v5313_v12 = vsel %vm1787_vm13, 1.0, %v5582_v42 }
 0xae3   :  { %2710 = vmatmul.mubr.msk.f32.vlgmr.msra.gmra.mrb[14].mxu1 %vm483_vm7, %v5313_v12 }
 0xae4   :  { %3226 = vmatpush1.bf16.msra.mxu1 %v4526_v56  ;;  %2589 = vmatprep.mubr.msk.f32.mxu1 %vm115_vm0, %v1956_v55  ;;  %v5652_v56 = vld [vmem:[#allocation15_spill] sm:$0xff] }
 0xae5   :  { %3228 = vmatprep.subr.bf16.mxu1 %v4531_v47  ;;  %v5654_v47 = vld [vmem:[#allocation17_spill] sm:$0xff] }
 0xae8   :  { %3230 = vmatpush1.bf16.msra.mxu1 %v4551_v60  ;;  %v5655_v60 = vld [vmem:[#allocation18_spill] sm:$0xff] }
 0xae9   :  { %3232 = vmatprep.subr.bf16.mxu1 %v5645_v39 }
 0xaec   :  { %3234 = vmatpush1.bf16.msra.mxu1 %v5646_v63 }
 0xaed   :  { %3236 = vmatprep.subr.bf16.mxu1 %v5647_v37  ;;  %v5680_v37 = vld [vmem:[#allocation43_spill] sm:$0xff] }
 0xaf0   :  { %3238 = vmatpush1.bf16.msra.mxu1 %v5648_v48  ;;  %v2031_v48 = vmul.f32 0.9048374, %v5680_v37 }
 0xaf1   :  { %3240 = vmatprep.subr.bf16.mxu1 %v5649_v23 }
 0xaf4   :  { %3242 = vmatpush1.bf16.msra.mxu1 %v5650_v27 }
 0xaf5   :  { %3244 = vmatprep.subr.bf16.mxu1 %v5651_v1  ;;  %v5681_v1 = vld [vmem:[#allocation44_spill] sm:$0xff] }
 0xaf8   :  { %3246 = vmatpush1.bf16.msra.mxu1 %v5652_v56  ;;  %v2032_v56 = vmul.f32 0.9048374, %v5681_v1 }
 0xaf9   :  { %3248 = vmatprep.subr.bf16.mxu1 %v5653_v3 }
 0xafc   :  { %3250 = vmatpush1.bf16.msra.mxu1 %v5654_v47  ;;  %v2571_v47 = vsel %vm1422_vm8, 1.0, %v5582_v42 }
 0xafd   :  { %3252 = vmatprep.subr.bf16.mxu1 %v5655_v60 }
 0xb00   :  { %3254 = vmatpush1.bf16.msra.mxu1 %v5656_v6  ;;  %v2572_v6 = vsel %vm1423_vm5, 1.0, %v5582_v42 }
 0xb01   :  { %3256 = vmatprep.subr.bf16.mxu1 %v5657_v8 }
 0xb04   :  { %3258 = vmatpush1.bf16.msra.mxu1 %v5658_v35 }
 0xb05   :  { %3260 = vmatprep.subr.bf16.mxu1 %v5659_v54  ;;  %v2107_v54 = vld [vmem:[%s5480_s4] sm:$0x3]  ;;  %s3446_s4 = smov [#allocation4]  }
 0xb06   :  { %s2516_s5 = sshll.u32 %s3446_s4, 4  ;;  %s2517_s5 = int_to_ptr.vmem [resolvable:$true] %s2516_s5 }
 0xb07   :  { %s3394_s21 = scalar_lea.vmem %s2517_s5, 128  ;;  %p3399_p1 = scmp.lt.s32.totalorder %s2517_s5, %s2517_s5 }
 0xb08   :  { %3262 = vmatpush1.bf16.msra.mxu1 %v5660_v52  ;;  %v2112_v52 = vrot.slane %v2107_v54, %v4162_v36  ;;  %p3395_p0 = scmp.ne.s32.totalorder %s2517_s5, %s3394_s21  ;;  %p3400_p2 = scmp.lt.s32.totalorder %s3394_s21, %s3394_s21 }
 0xb09   :  { %3264 = vmatprep.subr.bf16.mxu1 %v5661_v28  ;;  %v2116_v28 = vrot.slane %v2107_v54, %v4167_v11 }
 0xb0a   :  { %p3401_p3 = por %p3400_p2, %p3399_p1 }
 0xb0c   :  { %3266 = vmatpush1.bf16.msra.mxu1 %v5662_v10  ;;  %p3402_p4 = pnand %p3401_p3, %p3395_p0 }
 0xb0d   :  { %3268 = vmatprep.subr.bf16.mxu1 %v5663_v62 }
 0xb10   :  { %3270 = vmatpush1.bf16.msra.mxu1 %v5664_v21 }
 0xb11   :  { %2008 = vmatprep.subr.mxu1 %v5665_v59 }
 0xb14   :  { %2009 = vmatpush1.msra.mxu1 %v5666_v17  ;;  %v2191_v17 = vmul.f32 0.9048374, %v5196_v31 }
 0xb15   :  { %2025 = vmatmul.mubr.f32.vlgmr.msra.gmra.mrb[16].mxu1 %v2588_v18  ;;  %3335 = vmatprep.subr.bf16.mxu1 %v5629_v34 }
 0xb16   :  { %3337 = vmatpush1.bf16.msra.mxu1 %v5667_v45 }
 0xb17   :  { %3338 = vmatprep.subr.bf16.mxu1 %v5629_v34 }
 0xb1a   :  { %3340 = vmatpush1.bf16.msra.mxu1 %v5668_v25 }
 0xb1b   :  { %3341 = vmatprep.subr.bf16.mxu1 %v5629_v34 }
 0xb1e   :  { %3343 = vmatpush1.bf16.msra.mxu1 %v5669_v26 }
 0xb1f   :  { %3344 = vmatprep.subr.bf16.mxu1 %v5629_v34 }
 0xb22   :  { %3346 = vmatpush1.bf16.msra.mxu1 %v5670_v2 }
 0xb23   :  { %3347 = vmatprep.subr.bf16.mxu1 %v5629_v34 }
 0xb26   :  { %3349 = vmatpush1.bf16.msra.mxu1 %v5671_v15  ;;  %v2309_v15 = vmul.f32 0.9048374, %v5268_v49  ;;  %v2399_v49 = vmul.f32 0.9048374, %v5309_v61 }
 0xb27   :  { %3350 = vmatprep.subr.bf16.mxu1 %v5629_v34 }
 0xb2a   :  { %3352 = vmatpush1.bf16.msra.mxu1 %v5672_v41 }
 0xb2b   :  { %3353 = vmatprep.subr.bf16.mxu1 %v5629_v34 }
 0xb2e   :  { %3355 = vmatpush1.bf16.msra.mxu1 %v5673_v13 }
 0xb2f   :  { %3356 = vmatprep.subr.bf16.mxu1 %v5629_v34 }
 0xb32   :  { %3358 = vmatpush1.bf16.msra.mxu1 %v5674_v57 }
 0xb33   :  { %3359 = vmatprep.subr.bf16.mxu1 %v5629_v34 }
 0xb36   :  { %3361 = vmatpush1.bf16.msra.mxu1 %v5675_v44 }
 0xb37   :  { %3362 = vmatprep.subr.bf16.mxu1 %v5629_v34 }
 0xb3a   :  { %3364 = vmatpush1.bf16.msra.mxu1 %v5676_v38 }
 0xb3b   :  { %3365 = vmatprep.subr.bf16.mxu1 %v5629_v34 }
 0xb3e   :  { %3367 = vmatpush1.bf16.msra.mxu1 %v5677_v53 }
 0xb3f   :  { %3368 = vmatprep.subr.bf16.mxu1 %v5629_v34 }
 0xb42   :  { %3370 = vmatpush1.bf16.msra.mxu1 %v5162_v7 }
 0xb43   :  { %3371 = vmatprep.subr.bf16.mxu1 %v5629_v34 }
 0xb46   :  { %3373 = vmatpush1.bf16.msra.mxu1 %v5172_v20 }
 0xb47   :  { %2291 = vmatprep.subr.mxu1 %v5582_v42 }
 0xb4a   :  { %2292 = vmatpush1.msra.mxu1 %v5179_v43  ;;  %v1936_v43 = vld [vmem:[%s5478_s2] sm:$0x3] }
 0xb4b   :  { %v1941_v18 = vrot.slane %v1936_v43, %v4162_v36  ;;  %v1945_v55 = vrot.slane %v1936_v43, %v4167_v11 }
 0xbb6   :  { %v1870_v40 = vpop.f32.mrb[14].mxu1 }
 0xbb7   :  { %v1871_v14 = vadd.f32 %v5374_v0, %v1870_v40  ;;  %v2711_v51 = vpop.f32.mrb[15].mxu1 }
 0xbb9   :  { %v1875_v7 = vadd.f32 %v1874_v58, %v1871_v14 }
 0xbbb   :  { %v5379_v32 = vsub.f32 %v1875_v7, %v5679_v29 }
 0xbbd   :  { %1883 = vst.msk [vmem:[#allocation4 + $0x4] sm:$0x3] %vm651_vm10, %v5379_v32  ;;  %vm1877_vm0 = vcmp.gt.f32.partialorder %v5379_v32, 1.0 }
 0xbbe   :  { %v5385_v20 = vsel %vm1877_vm0, 1.0, %v5582_v42 }
 0xbbf   :  { %1881 = vst.msk [vmem:[#allocation2 + $0x4] sm:$0x3] %vm651_vm10, %v5385_v20 }
 0xbe8   :  { %v2026_v39 = vpop.f32.mrb[16].mxu1 }
 0xbe9   :  { %v2027_v63 = vadd.f32 %v2026_v39, %v1941_v18  ;;  %v2028_v23 = vpop.f32.mrb[17].mxu1 }
 0xbea   :  { %v2029_v27 = vadd.f32 %v2028_v23, %v1945_v55 }
 0xbeb   :  { %v2033_v3 = vadd.f32 %v2031_v48, %v2027_v63 }
 0xbec   :  { %v2034_v60 = vadd.f32 %v2032_v56, %v2029_v27 }
 0xbed   :  { %v2035_v8 = vsub.f32 %v2033_v3, %v2571_v47 }
 0xbee   :  { %v2036_v35 = vsub.f32 %v2034_v60, %v2572_v6 }
 0xbef   :  { %vm2037_vm15 = vcmp.gt.f32.partialorder %v2035_v8, 1.0 }
 0xbf0   :  { %vm2038_vm14 = vcmp.gt.f32.partialorder %v2036_v35, 1.0 }
 0xbf1   :  { %2592 = vmatprep.mubr.msk.f32.mxu0 %vm2038_vm14, %v5583_v30 }
 0xbf2   :  { %2593 = vmatmul.mubr.msk.f32.vlgmr.msra.gmra.mrb[14].mxu0 %vm2037_vm15, %v5583_v30 }
 0xbf3   :  { %3376 = vmatpush3.bf16.msra.mxu0 %v5246_v33  ;;  %2720 = vmatprep.mubr.msk.f32.mxu0 %vm3445_vm6, %v5582_v42  ;;  %v2190_v33 = vmul.f32 0.9048374, %v5193_v22 }
 0xbf4   :  { %3377 = vmatprep.subr.bf16.mxu0 %v5629_v34 }
 0xbf7   :  { %3379 = vmatpush3.bf16.msra.mxu0 %v5256_v5  ;;  %v2575_v5 = vsel %vm1581_vm11, 1.0, %v5582_v42 }
 0xbf8   :  { %3380 = vmatprep.subr.bf16.mxu0 %v5629_v34 }
 0xcc5   :  { %v2185_v10 = vpop.f32.mrb[14].mxu0 }
 0xcc6   :  { %v2186_v62 = vadd.f32 %v2185_v10, %v2112_v52  ;;  %v2187_v21 = vpop.f32.mrb[15].mxu0 }
 0xcc7   :  { %v2188_v59 = vadd.f32 %v2187_v21, %v2116_v28 }
 0xcc8   :  { %v2192_v45 = vadd.f32 %v2190_v33, %v2186_v62 }
 0xcc9   :  { %v2193_v25 = vadd.f32 %v2191_v17, %v2188_v59 }
 0xcca   :  { %v2194_v26 = vsub.f32 %v2192_v45, %v2575_v5 }
 0xccb   :  { %v2195_v2 = vsub.f32 %v2193_v25, %v5200_v4 }
 0xccc   :  { %vm2196_vm2 = vcmp.gt.f32.partialorder %v2194_v26, 1.0 }
 0xccd   :  { %vm2197_vm1 = vcmp.gt.f32.partialorder %v2195_v2, 1.0 }
 0xcce   :  { %v2595_v11 = vsel %vm2197_vm1, 1.0, %v5582_v42 }
 0xccf   :  { %2597 = vmatprep.mubr.msk.f32.mxu1 %vm393_vm3, %v2595_v11 }
 0xcd0   :  { %2598 = vmatmul.mubr.msk.f32.vlgmr.msra.gmra.mrb[18].mxu1 %vm2196_vm2, %v5583_v30 }
 0xda3   :  { %v2305_v36 = vpop.f32.mrb[18].mxu1 }
 0xda4   :  { %v2306_v31 = vadd.f32 %v5263_v46, %v2305_v36  ;;  %v2307_v41 = vpop.f32.mrb[19].mxu1 }
 0xda6   :  { %v2310_v22 = vadd.f32 %v2309_v15, %v2306_v31 }
 0xda8   :  { %v2311_v13 = vsub.f32 %v2310_v22, %v5272_v50 }
 0xdaa   :  { %vm2312_vm4 = vcmp.gt.f32.partialorder %v2311_v13, 1.0 }
 0xdab   :  { %v2599_v4 = vsel %vm2312_vm4, 1.0, %v5582_v42 }
 0xdac   :  { %2721 = vmatmul.mubr.msk.f32.vlgmr.msra.gmra.mrb[16].mxu0 %vm483_vm7, %v2599_v4 }
 0xdad   :  { %3382 = vmatpush3.bf16.msra.mxu0 %v5284_v9  ;;  %2731 = vmatprep.mubr.msk.f32.mxu0 %vm3445_vm6, %v5582_v42 }
 0xdae   :  { %3383 = vmatprep.subr.bf16.mxu0 %v5629_v34  ;;  %v2489_v34 = vmul.f32 0.9048374, %v5379_v32 }
 0xdb1   :  { %3385 = vmatpush3.bf16.msra.mxu0 %v5294_v19 }
 0xe7f   :  { %v2395_v30 = vpop.f32.mrb[16].mxu0 }
 0xe80   :  { %v2396_v46 = vadd.f32 %v5301_v16, %v2395_v30  ;;  %v2722_v50 = vpop.f32.mrb[17].mxu0 }
 0xe82   :  { %v2400_v57 = vadd.f32 %v2399_v49, %v2396_v46 }
 0xe84   :  { %v2401_v44 = vsub.f32 %v2400_v57, %v5313_v12 }
 0xe86   :  { %vm2402_vm3 = vcmp.gt.f32.partialorder %v2401_v44, 1.0 }
 0xe87   :  { %v2602_v38 = vsel %vm2402_vm3, 1.0, %v5582_v42 }
 0xe88   :  { %2732 = vmatmul.mubr.msk.f32.vlgmr.msra.gmra.mrb[18].mxu0 %vm483_vm7, %v2602_v38 }
 0xf5b   :  { %v2485_v9 = vpop.f32.mrb[18].mxu0 }
 0xf5c   :  { %v2486_v53 = vadd.f32 %v5374_v0, %v2485_v9  ;;  %v2733_v19 = vpop.f32.mrb[19].mxu0 }
 0xf5e   :  { %v2490_v16 = vadd.f32 %v2489_v34, %v2486_v53 }
 0xf60   :  { %v2491_v61 = vsub.f32 %v2490_v16, %v5385_v20 }
 0xf62   :  { %vm2492_vm6 = vcmp.gt.f32.partialorder %v2491_v61, 1.0  ;;  %2498 = vst.msk [vmem:[#allocation4 + $0x6] sm:$0x3] %vm651_vm10, %v2491_v61 }
 0xf63   :  { %v2605_v12 = vsel %vm2492_vm6, 1.0, %v5582_v42 }
 0xf64   :  { %3405 = shalt.err (!%p3402_p4)
}
 0xf65   :  { %s3406_s23 = scalar_lea.hbm %s5488_s12, 128 }
 0xf66   :  { %p3407_p5 = scmp.ne.s32.totalorder %s5488_s12, %s3406_s23  ;;  %p3410_p6 = scmp.lt.u32.totalorder %s3406_s23, %s5488_s12 }
 0xf68   :  { %p3412_p7 = pnand %p3410_p6, %p3407_p5 }
 0xf6a   :  { %3415 = shalt.err (!%p3412_p7)
}
 0xf6b   :  { %s3448_s7 = smov 32   ;;  %s3449_s26 = smov 2   ;;  %2496 = vst.msk [vmem:[#allocation2 + $0x6] sm:$0x3] %vm651_vm10, %v2605_v12 }
 0xf6c   :  { %2522 = dma.vmem_to_hbm [thread:$0]  %s2517_s5, 128, %s5488_s12, [#allocation5], %s3448_s7, %s3448_s7, %s3449_s26  }
 0xf6d   :  { %s3416_s29 = scalar_lea.vmem %s5443_s20, 128  ;;  %p3421_p9 = scmp.lt.s32.totalorder %s5443_s20, %s5443_s20 }
 0xf6e   :  { %p3417_p8 = scmp.ne.s32.totalorder %s5443_s20, %s3416_s29  ;;  %p3422_p10 = scmp.lt.s32.totalorder %s3416_s29, %s3416_s29 }
 0xf70   :  { %p3423_p11 = por %p3422_p10, %p3421_p9 }
 0xf72   :  { %p3424_p12 = pnand %p3423_p11, %p3417_p8 }
 0xf74   :  { %3427 = shalt.err (!%p3424_p12)
}
 0xf75   :  { %s3428_s14 = scalar_lea.hbm %s5487_s11, 128 }
 0xf76   :  { %p3429_p13 = scmp.ne.s32.totalorder %s5487_s11, %s3428_s14  ;;  %p3432_p0 = scmp.lt.u32.totalorder %s3428_s14, %s5487_s11 }
 0xf78   :  { %p3434_p1 = pnand %p3432_p0, %p3429_p13 }
 0xf7a   :  { %3437 = shalt.err (!%p3434_p1)
}
 0xf7b   :  { %2510 = dma.vmem_to_hbm [thread:$0]  %s5443_s20, 128, %s5487_s11, [#allocation3], %s3448_s7, %s3448_s7, %s3449_s26  }
 0xf7c   :  { %3438 = dma.done.wait [#allocation3], 128  }
 0xf7d   :  { %3439 = vsyncadd [#allocation3], 4294967168 }
 0xf7e   :  { %3440 = dma.done.wait [#allocation5], 128  }
 0xf7f   :  { %3441 = vsyncadd [#allocation5], 4294967168 }
 0xf80   :  { %2529 = vsyncpa [#allocation3], 1 }
 0xf81   :  { %2530 = vsyncpa [#allocation5], 1 }

</bundles_post_ra>
